<compile_context>
chip_gen: v7x
topology: tpu7x:2x2x1
jax: 0.10.0
libtpu: 0.0.40
codegen_flags: <defaults>
</compile_context>

<pallas_src>
import numpy as np

import jax
import jax.numpy as jnp
from jax import lax
from jax.experimental import pallas as pl
from jax.experimental.pallas import tpu as pltpu


# ---------------------------------------------------------------------------
# Wrapper-side operand construction (weight preprocessing only, all static).
# ---------------------------------------------------------------------------
def _shift_matrices(n_img, h_in, h_out, kh, pad):
    """0/1 row-shift matrices, one per vertical tap: (kh, n_img*h_out, n_img*h_in).

    S[dy] @ A picks, for every output row (n, y), the input row (n, y+dy-pad)
    (zero when out of range), i.e. the vertical part of the conv window
    including the 'same' zero padding. Block-diagonal over the batch so images
    never bleed into each other. Values are exact in bf16.
    """
    eye_n = np.eye(n_img, dtype=np.float32)
    taps = []
    for dy in range(kh):
        sh = np.zeros((h_out, h_in), np.float32)
        for y in range(h_out):
            yin = y + dy - pad
            if 0 <= yin < h_in:
                sh[y, yin] = 1.0
        taps.append(np.kron(eye_n, sh))
    return np.stack(taps)


def _toeplitz_matrices(wt, w_in, w_out, pad):
    """Block-Toeplitz weight matrices, one per vertical tap.

    With activations A[(n*H + y), (x*Cin + ci)], the horizontal taps,
    horizontal zero padding and channel contraction of vertical tap dy become
    one matmul with
        M[dy][(x+dx-pad)*Cin + ci, x*Cout + co] = wt[co, ci, dy, dx].
    wt: (Cout, Cin, KH, KW)  ->  (KH, w_in*Cin, w_out*Cout)
    """
    cout, cin, kh, kw = wt.shape
    taps = []
    for dy in range(kh):
        m = jnp.zeros((w_in * cin, w_out * cout), jnp.float32)
        for dx in range(kw):
            d = np.zeros((w_in, w_out), np.float32)
            for x in range(w_out):
                xin = x + dx - pad
                if 0 <= xin < w_in:
                    d[xin, x] = 1.0
            m = m + jnp.kron(jnp.asarray(d), wt[:, :, dy, dx].T)
        taps.append(m)
    return jnp.stack(taps)


def _pool_selectors(n_img, h, w, c, p):
    """0/1 row/col selectors implementing MaxPool2d(p) (kernel=p, stride=p, floor)."""
    ho, wo = h // p, w // p
    eye_n = np.eye(n_img, dtype=np.float32)
    eye_c = np.eye(c, dtype=np.float32)
    rows, cols = [], []
    for j in range(p):
        pr = np.zeros((ho, h), np.float32)
        pr[np.arange(ho), p * np.arange(ho) + j] = 1.0
        rows.append(np.kron(eye_n, pr))
        qc = np.zeros((w, wo), np.float32)
        qc[p * np.arange(wo) + j, np.arange(wo)] = 1.0
        cols.append(np.kron(qc, eye_c))
    return np.stack(rows), np.stack(cols), ho, wo


def build_fcn_operands(x_nchw, conv_params, fcnn_params, pools):
    """Lower the FCN to a flat list of VMEM-resident kernel operands + static plan."""
    n, c, h, w = x_nchw.shape
    a0 = jnp.transpose(x_nchw, (0, 2, 3, 1)).astype(jnp.float32).reshape(n * h, w * c)
    operands = [a0.astype(jnp.bfloat16)]
    plan = []

    # conv_layers: Conv2d(k, padding='same') -> ReLU -> MaxPool2d(p)
    for (wt, b), p in zip(conv_params, pools):
        cout, cin, kh, kw = wt.shape
        assert cin == c
        pad = (kh - 1) // 2                                   # 'same' (odd kernels)
        s = _shift_matrices(n, h, h, kh, pad)
        m = _toeplitz_matrices(wt, w, w, pad)
        brow = jnp.tile(b.astype(jnp.float32), w).reshape(1, w * cout)
        operands += [jnp.asarray(s, jnp.bfloat16), m.astype(jnp.bfloat16), brow]
        c = cout
        if p:
            pr, qc, h, w = _pool_selectors(n, h, w, c, p)
            operands += [jnp.asarray(pr, jnp.bfloat16), jnp.asarray(qc, jnp.bfloat16)]
        plan.append(dict(taps=kh, relu=True, pool=p))

    # fcnn_layers: 'valid' convs (first consumes all remaining spatial, rest 1x1)
    for wt, b in fcnn_params:
        cout, cin, kh, kw = wt.shape
        assert cin == c
        h_out, w_out = h - kh + 1, w - kw + 1
        s = _shift_matrices(n, h, h_out, kh, 0)
        m = _toeplitz_matrices(wt, w, w_out, 0)
        brow = jnp.tile(b.astype(jnp.float32), w_out).reshape(1, w_out * cout)
        operands += [jnp.asarray(s, jnp.bfloat16), m.astype(jnp.bfloat16), brow]
        plan.append(dict(taps=kh, relu=False, pool=0))
        h, w, c = h_out, w_out, cout

    # AdaptiveAvgPool2d(1): mean over remaining spatial (identity when already 1x1).
    rg = np.kron(np.eye(n, dtype=np.float32), np.full((1, h), 1.0 / h, np.float32))
    cg = np.kron(np.full((w, 1), 1.0 / w, np.float32), np.eye(c, dtype=np.float32))
    operands += [jnp.asarray(rg, jnp.float32), jnp.asarray(cg, jnp.float32)]
    return operands, plan, (n, c)


# ---------------------------------------------------------------------------
# The single fused Pallas kernel.
# ---------------------------------------------------------------------------
def _make_fcn_kernel(plan):
    f32 = jnp.float32
    bf16 = jnp.bfloat16

    def kernel(*refs):
        o_ref = refs[-1]
        it = iter(refs[:-1])
        a = next(it)[...]                                   # (N*H, W*C) bf16
        y = None
        for layer in plan:
            s_ref, m_ref, b_ref = next(it), next(it), next(it)
            acc = None
            for t in range(layer["taps"]):                  # static unroll
                shifted = jnp.dot(s_ref[t], a,
                                  preferred_element_type=f32).astype(bf16)
                part = jnp.dot(shifted, m_ref[t], preferred_element_type=f32)
                acc = part if acc is None else acc + part
            y = acc + b_ref[...]                            # bias (f32)
            if layer["relu"]:
                y = jnp.maximum(y, 0.0)                     # fused ReLU epilogue
            p = layer["pool"]
            if p:                                           # fused 2x2 max-pool
                pr_ref, qc_ref = next(it), next(it)
                yb = y.astype(bf16)
                v = None
                for j in range(p):
                    vj = jnp.dot(pr_ref[j], yb, preferred_element_type=f32)
                    v = vj if v is None else jnp.maximum(v, vj)
                vb = v.astype(bf16)
                hm = None
                for j in range(p):
                    hj = jnp.dot(vb, qc_ref[j], preferred_element_type=f32)
                    hm = hj if hm is None else jnp.maximum(hm, hj)
                y = hm
            a = y.astype(bf16)
        # Global average pool (f32, exact; identity for 1x1 spatial).
        rg_ref, cg_ref = next(it), next(it)
        g = jnp.dot(rg_ref[...], y, preferred_element_type=f32)
        o_ref[...] = jnp.dot(g, cg_ref[...], preferred_element_type=f32)

    return kernel


def fcn_forward(x_nchw, conv_params, fcnn_params, pools):
    operands, plan, (n, classes) = build_fcn_operands(
        x_nchw, conv_params, fcnn_params, pools)
    out = pl.pallas_call(
        _make_fcn_kernel(plan),
        out_shape=jax.ShapeDtypeStruct((n, classes), jnp.float32),
        in_specs=[pl.BlockSpec(memory_space=pltpu.MemorySpace.VMEM)
                  for _ in operands],
        out_specs=pl.BlockSpec(memory_space=pltpu.MemorySpace.VMEM),
    )(*operands)
    return jnp.squeeze(out)                                  # mirror torch.squeeze


# ---------------------------------------------------------------------------
# Pure-JAX f32 reference (mirrors the PyTorch forward, NCHW).
# ---------------------------------------------------------------------------
def ref_forward(x_nchw, conv_params, fcnn_params, pools):
    y = x_nchw.astype(jnp.float32)
    for (w, b), p in zip(conv_params, pools):
        y = lax.conv_general_dilated(
            y, w, (1, 1), "SAME", dimension_numbers=("NCHW", "OIHW", "NCHW"))
        y = y + b[None, :, None, None]
        y = jnp.maximum(y, 0.0)
        if p:
            y = lax.reduce_window(y, -jnp.inf, lax.max,
                                  (1, 1, p, p), (1, 1, p, p), "VALID")
    for (w, b) in fcnn_params:
        y = lax.conv_general_dilated(
            y, w, (1, 1), "VALID", dimension_numbers=("NCHW", "OIHW", "NCHW"))
        y = y + b[None, :, None, None]
    y = jnp.mean(y, axis=(2, 3))                             # AdaptiveAvgPool2d(1)
    return jnp.squeeze(y)                                    # torch.squeeze


# ---------------------------------------------------------------------------
if __name__ == "__main__":
    batch, in_ch, side = 2, 4, 16
    filters = [8, 16]
    kernels = [3, 3]
    pools = [2, 2]
    fully_convolutional = [32]
    classes = 10

    key = jax.random.PRNGKey(0)
    keys = jax.random.split(key, 16)
    ki = iter(range(16))

    conv_params = []
    cin = in_ch
    for f, k in zip(filters, kernels):
        w = jax.random.normal(keys[next(ki)], (f, cin, k, k), jnp.float32) * 0.1
        b = jax.random.normal(keys[next(ki)], (f,), jnp.float32) * 0.1
        conv_params.append((w, b))
        cin = f

    # Spatial dims after the pooling stages: 16 -> 8 -> 4 (module's formula).
    dims = side
    for p in pools:
        if p:
            dims = int((dims - (p - 1) - 1) / p + 1)

    fcnn_chans = fully_convolutional + [classes]
    fcnn_params = []
    prev = filters[-1]
    kdims = dims
    for cout in fcnn_chans:
        w = jax.random.normal(keys[next(ki)], (cout, prev, kdims, kdims),
                              jnp.float32) * 0.1
        b = jax.random.normal(keys[next(ki)], (cout,), jnp.float32) * 0.1
        fcnn_params.append((w, b))
        prev = cout
        kdims = 1                                            # later fcnn layers are 1x1

    x = jax.random.normal(keys[next(ki)], (batch, in_ch, side, side), jnp.float32)

    out = jax.block_until_ready(fcn_forward(x, conv_params, fcnn_params, pools))
    ref = jax.block_until_ready(ref_forward(x, conv_params, fcnn_params, pools))

    assert out.shape == (batch, classes), out.shape
    # bf16 MXU operands with f32 accumulation -> tolerance loosened vs pure f32.
    assert jnp.allclose(out, ref, atol=5e-2, rtol=5e-2), (out, ref)

    print("KERNEL_OK")
</pallas_src>

<mosaic_0001>
module attributes {stable_mosaic.version = 11 : i64} {
  func.func @kernel(%arg0: memref<32x64xbf16, #tpu.memory_space<vmem>>, %arg1: memref<3x32x32xbf16, #tpu.memory_space<vmem>>, %arg2: memref<3x64x128xbf16, #tpu.memory_space<vmem>>, %arg3: memref<1x128xf32, #tpu.memory_space<vmem>>, %arg4: memref<2x16x32xbf16, #tpu.memory_space<vmem>>, %arg5: memref<2x128x64xbf16, #tpu.memory_space<vmem>>, %arg6: memref<3x16x16xbf16, #tpu.memory_space<vmem>>, %arg7: memref<3x64x128xbf16, #tpu.memory_space<vmem>>, %arg8: memref<1x128xf32, #tpu.memory_space<vmem>>, %arg9: memref<2x8x16xbf16, #tpu.memory_space<vmem>>, %arg10: memref<2x128x64xbf16, #tpu.memory_space<vmem>>, %arg11: memref<4x2x8xbf16, #tpu.memory_space<vmem>>, %arg12: memref<4x64x32xbf16, #tpu.memory_space<vmem>>, %arg13: memref<1x32xf32, #tpu.memory_space<vmem>>, %arg14: memref<1x2x2xbf16, #tpu.memory_space<vmem>>, %arg15: memref<1x32x10xbf16, #tpu.memory_space<vmem>>, %arg16: memref<1x10xf32, #tpu.memory_space<vmem>>, %arg17: memref<2x2xf32, #tpu.memory_space<vmem>>, %arg18: memref<10x10xf32, #tpu.memory_space<vmem>>, %arg19: memref<2x10xf32, #tpu.memory_space<vmem>>) attributes {dimension_semantics = [], scalar_prefetch = 0 : i64, scratch_operands = 0 : i64, tpu.core_type = #tpu.core_type<tc>} {
    %c0 = arith.constant 0 : index
    %c0_0 = arith.constant 0 : index
    %0 = vector.load %arg0[%c0, %c0_0] : memref<32x64xbf16, #tpu.memory_space<vmem>>, vector<32x64xbf16>
    %c0_1 = arith.constant 0 : index
    %c0_2 = arith.constant 0 : index
    %c0_3 = arith.constant 0 : index
    %1 = vector.load %arg1[%c0_1, %c0_2, %c0_3] : memref<3x32x32xbf16, #tpu.memory_space<vmem>>, vector<1x32x32xbf16>
    %2 = vector.shape_cast %1 : vector<1x32x32xbf16> to vector<32x32xbf16>
    %cst = arith.constant dense<0.000000e+00> : vector<32x64xf32>
    %3 = tpu.matmul %2, %0, %cst {dimension_numbers = #tpu.dot_dimension_numbers<[1], [0], [0], [1], [0, 0, 1, 1], [], []>} : vector<32x32xbf16>, vector<32x64xbf16>, vector<32x64xf32> -> vector<32x64xf32>
    %4 = arith.truncf %3 : vector<32x64xf32> to vector<32x64xbf16>
    %c0_4 = arith.constant 0 : index
    %c0_5 = arith.constant 0 : index
    %c0_6 = arith.constant 0 : index
    %5 = vector.load %arg2[%c0_4, %c0_5, %c0_6] : memref<3x64x128xbf16, #tpu.memory_space<vmem>>, vector<1x64x128xbf16>
    %6 = vector.shape_cast %5 : vector<1x64x128xbf16> to vector<64x128xbf16>
    %cst_7 = arith.constant dense<0.000000e+00> : vector<32x128xf32>
    %7 = tpu.matmul %4, %6, %cst_7 {dimension_numbers = #tpu.dot_dimension_numbers<[1], [0], [0], [1], [0, 0, 1, 1], [], []>} : vector<32x64xbf16>, vector<64x128xbf16>, vector<32x128xf32> -> vector<32x128xf32>
    %c1 = arith.constant 1 : index
    %c0_8 = arith.constant 0 : index
    %c0_9 = arith.constant 0 : index
    %8 = vector.load %arg1[%c1, %c0_8, %c0_9] : memref<3x32x32xbf16, #tpu.memory_space<vmem>>, vector<1x32x32xbf16>
    %9 = vector.shape_cast %8 : vector<1x32x32xbf16> to vector<32x32xbf16>
    %cst_10 = arith.constant dense<0.000000e+00> : vector<32x64xf32>
    %10 = tpu.matmul %9, %0, %cst_10 {dimension_numbers = #tpu.dot_dimension_numbers<[1], [0], [0], [1], [0, 0, 1, 1], [], []>} : vector<32x32xbf16>, vector<32x64xbf16>, vector<32x64xf32> -> vector<32x64xf32>
    %11 = arith.truncf %10 : vector<32x64xf32> to vector<32x64xbf16>
    %c1_11 = arith.constant 1 : index
    %c0_12 = arith.constant 0 : index
    %c0_13 = arith.constant 0 : index
    %12 = vector.load %arg2[%c1_11, %c0_12, %c0_13] : memref<3x64x128xbf16, #tpu.memory_space<vmem>>, vector<1x64x128xbf16>
    %13 = vector.shape_cast %12 : vector<1x64x128xbf16> to vector<64x128xbf16>
    %cst_14 = arith.constant dense<0.000000e+00> : vector<32x128xf32>
    %14 = tpu.matmul %11, %13, %cst_14 {dimension_numbers = #tpu.dot_dimension_numbers<[1], [0], [0], [1], [0, 0, 1, 1], [], []>} : vector<32x64xbf16>, vector<64x128xbf16>, vector<32x128xf32> -> vector<32x128xf32>
    %15 = arith.addf %7, %14 : vector<32x128xf32>
    %c2 = arith.constant 2 : index
    %c0_15 = arith.constant 0 : index
    %c0_16 = arith.constant 0 : index
    %16 = vector.load %arg1[%c2, %c0_15, %c0_16] : memref<3x32x32xbf16, #tpu.memory_space<vmem>>, vector<1x32x32xbf16>
    %17 = vector.shape_cast %16 : vector<1x32x32xbf16> to vector<32x32xbf16>
    %cst_17 = arith.constant dense<0.000000e+00> : vector<32x64xf32>
    %18 = tpu.matmul %17, %0, %cst_17 {dimension_numbers = #tpu.dot_dimension_numbers<[1], [0], [0], [1], [0, 0, 1, 1], [], []>} : vector<32x32xbf16>, vector<32x64xbf16>, vector<32x64xf32> -> vector<32x64xf32>
    %19 = arith.truncf %18 : vector<32x64xf32> to vector<32x64xbf16>
    %c2_18 = arith.constant 2 : index
    %c0_19 = arith.constant 0 : index
    %c0_20 = arith.constant 0 : index
    %20 = vector.load %arg2[%c2_18, %c0_19, %c0_20] : memref<3x64x128xbf16, #tpu.memory_space<vmem>>, vector<1x64x128xbf16>
    %21 = vector.shape_cast %20 : vector<1x64x128xbf16> to vector<64x128xbf16>
    %cst_21 = arith.constant dense<0.000000e+00> : vector<32x128xf32>
    %22 = tpu.matmul %19, %21, %cst_21 {dimension_numbers = #tpu.dot_dimension_numbers<[1], [0], [0], [1], [0, 0, 1, 1], [], []>} : vector<32x64xbf16>, vector<64x128xbf16>, vector<32x128xf32> -> vector<32x128xf32>
    %23 = arith.addf %15, %22 : vector<32x128xf32>
    %c0_22 = arith.constant 0 : index
    %c0_23 = arith.constant 0 : index
    %24 = vector.load %arg3[%c0_22, %c0_23] : memref<1x128xf32, #tpu.memory_space<vmem>>, vector<1x128xf32>
    %25 = vector.broadcast %24 : vector<1x128xf32> to vector<32x128xf32>
    %26 = arith.addf %23, %25 : vector<32x128xf32>
    %cst_24 = arith.constant 0.000000e+00 : f32
    %27 = vector.broadcast %cst_24 : f32 to vector<32x128xf32>
    %28 = arith.maximumf %26, %27 : vector<32x128xf32>
    %29 = arith.truncf %28 : vector<32x128xf32> to vector<32x128xbf16>
    %c0_25 = arith.constant 0 : index
    %c0_26 = arith.constant 0 : index
    %c0_27 = arith.constant 0 : index
    %30 = vector.load %arg4[%c0_25, %c0_26, %c0_27] : memref<2x16x32xbf16, #tpu.memory_space<vmem>>, vector<1x16x32xbf16>
    %31 = vector.shape_cast %30 : vector<1x16x32xbf16> to vector<16x32xbf16>
    %cst_28 = arith.constant dense<0.000000e+00> : vector<16x128xf32>
    %32 = tpu.matmul %31, %29, %cst_28 {dimension_numbers = #tpu.dot_dimension_numbers<[1], [0], [0], [1], [0, 0, 1, 1], [], []>} : vector<16x32xbf16>, vector<32x128xbf16>, vector<16x128xf32> -> vector<16x128xf32>
    %c1_29 = arith.constant 1 : index
    %c0_30 = arith.constant 0 : index
    %c0_31 = arith.constant 0 : index
    %33 = vector.load %arg4[%c1_29, %c0_30, %c0_31] : memref<2x16x32xbf16, #tpu.memory_space<vmem>>, vector<1x16x32xbf16>
    %34 = vector.shape_cast %33 : vector<1x16x32xbf16> to vector<16x32xbf16>
    %cst_32 = arith.constant dense<0.000000e+00> : vector<16x128xf32>
    %35 = tpu.matmul %34, %29, %cst_32 {dimension_numbers = #tpu.dot_dimension_numbers<[1], [0], [0], [1], [0, 0, 1, 1], [], []>} : vector<16x32xbf16>, vector<32x128xbf16>, vector<16x128xf32> -> vector<16x128xf32>
    %36 = arith.maximumf %32, %35 : vector<16x128xf32>
    %37 = arith.truncf %36 : vector<16x128xf32> to vector<16x128xbf16>
    %c0_33 = arith.constant 0 : index
    %c0_34 = arith.constant 0 : index
    %c0_35 = arith.constant 0 : index
    %38 = vector.load %arg5[%c0_33, %c0_34, %c0_35] : memref<2x128x64xbf16, #tpu.memory_space<vmem>>, vector<1x128x64xbf16>
    %39 = vector.shape_cast %38 : vector<1x128x64xbf16> to vector<128x64xbf16>
    %cst_36 = arith.constant dense<0.000000e+00> : vector<16x64xf32>
    %40 = tpu.matmul %37, %39, %cst_36 {dimension_numbers = #tpu.dot_dimension_numbers<[1], [0], [0], [1], [0, 0, 1, 1], [], []>} : vector<16x128xbf16>, vector<128x64xbf16>, vector<16x64xf32> -> vector<16x64xf32>
    %c1_37 = arith.constant 1 : index
    %c0_38 = arith.constant 0 : index
    %c0_39 = arith.constant 0 : index
    %41 = vector.load %arg5[%c1_37, %c0_38, %c0_39] : memref<2x128x64xbf16, #tpu.memory_space<vmem>>, vector<1x128x64xbf16>
    %42 = vector.shape_cast %41 : vector<1x128x64xbf16> to vector<128x64xbf16>
    %cst_40 = arith.constant dense<0.000000e+00> : vector<16x64xf32>
    %43 = tpu.matmul %37, %42, %cst_40 {dimension_numbers = #tpu.dot_dimension_numbers<[1], [0], [0], [1], [0, 0, 1, 1], [], []>} : vector<16x128xbf16>, vector<128x64xbf16>, vector<16x64xf32> -> vector<16x64xf32>
    %44 = arith.maximumf %40, %43 : vector<16x64xf32>
    %45 = arith.truncf %44 : vector<16x64xf32> to vector<16x64xbf16>
    %c0_41 = arith.constant 0 : index
    %c0_42 = arith.constant 0 : index
    %c0_43 = arith.constant 0 : index
    %46 = vector.load %arg6[%c0_41, %c0_42, %c0_43] : memref<3x16x16xbf16, #tpu.memory_space<vmem>>, vector<1x16x16xbf16>
    %47 = vector.shape_cast %46 : vector<1x16x16xbf16> to vector<16x16xbf16>
    %cst_44 = arith.constant dense<0.000000e+00> : vector<16x64xf32>
    %48 = tpu.matmul %47, %45, %cst_44 {dimension_numbers = #tpu.dot_dimension_numbers<[1], [0], [0], [1], [0, 0, 1, 1], [], []>} : vector<16x16xbf16>, vector<16x64xbf16>, vector<16x64xf32> -> vector<16x64xf32>
    %49 = arith.truncf %48 : vector<16x64xf32> to vector<16x64xbf16>
    %c0_45 = arith.constant 0 : index
    %c0_46 = arith.constant 0 : index
    %c0_47 = arith.constant 0 : index
    %50 = vector.load %arg7[%c0_45, %c0_46, %c0_47] : memref<3x64x128xbf16, #tpu.memory_space<vmem>>, vector<1x64x128xbf16>
    %51 = vector.shape_cast %50 : vector<1x64x128xbf16> to vector<64x128xbf16>
    %cst_48 = arith.constant dense<0.000000e+00> : vector<16x128xf32>
    %52 = tpu.matmul %49, %51, %cst_48 {dimension_numbers = #tpu.dot_dimension_numbers<[1], [0], [0], [1], [0, 0, 1, 1], [], []>} : vector<16x64xbf16>, vector<64x128xbf16>, vector<16x128xf32> -> vector<16x128xf32>
    %c1_49 = arith.constant 1 : index
    %c0_50 = arith.constant 0 : index
    %c0_51 = arith.constant 0 : index
    %53 = vector.load %arg6[%c1_49, %c0_50, %c0_51] : memref<3x16x16xbf16, #tpu.memory_space<vmem>>, vector<1x16x16xbf16>
    %54 = vector.shape_cast %53 : vector<1x16x16xbf16> to vector<16x16xbf16>
    %cst_52 = arith.constant dense<0.000000e+00> : vector<16x64xf32>
    %55 = tpu.matmul %54, %45, %cst_52 {dimension_numbers = #tpu.dot_dimension_numbers<[1], [0], [0], [1], [0, 0, 1, 1], [], []>} : vector<16x16xbf16>, vector<16x64xbf16>, vector<16x64xf32> -> vector<16x64xf32>
    %56 = arith.truncf %55 : vector<16x64xf32> to vector<16x64xbf16>
    %c1_53 = arith.constant 1 : index
    %c0_54 = arith.constant 0 : index
    %c0_55 = arith.constant 0 : index
    %57 = vector.load %arg7[%c1_53, %c0_54, %c0_55] : memref<3x64x128xbf16, #tpu.memory_space<vmem>>, vector<1x64x128xbf16>
    %58 = vector.shape_cast %57 : vector<1x64x128xbf16> to vector<64x128xbf16>
    %cst_56 = arith.constant dense<0.000000e+00> : vector<16x128xf32>
    %59 = tpu.matmul %56, %58, %cst_56 {dimension_numbers = #tpu.dot_dimension_numbers<[1], [0], [0], [1], [0, 0, 1, 1], [], []>} : vector<16x64xbf16>, vector<64x128xbf16>, vector<16x128xf32> -> vector<16x128xf32>
    %60 = arith.addf %52, %59 : vector<16x128xf32>
    %c2_57 = arith.constant 2 : index
    %c0_58 = arith.constant 0 : index
    %c0_59 = arith.constant 0 : index
    %61 = vector.load %arg6[%c2_57, %c0_58, %c0_59] : memref<3x16x16xbf16, #tpu.memory_space<vmem>>, vector<1x16x16xbf16>
    %62 = vector.shape_cast %61 : vector<1x16x16xbf16> to vector<16x16xbf16>
    %cst_60 = arith.constant dense<0.000000e+00> : vector<16x64xf32>
    %63 = tpu.matmul %62, %45, %cst_60 {dimension_numbers = #tpu.dot_dimension_numbers<[1], [0], [0], [1], [0, 0, 1, 1], [], []>} : vector<16x16xbf16>, vector<16x64xbf16>, vector<16x64xf32> -> vector<16x64xf32>
    %64 = arith.truncf %63 : vector<16x64xf32> to vector<16x64xbf16>
    %c2_61 = arith.constant 2 : index
    %c0_62 = arith.constant 0 : index
    %c0_63 = arith.constant 0 : index
    %65 = vector.load %arg7[%c2_61, %c0_62, %c0_63] : memref<3x64x128xbf16, #tpu.memory_space<vmem>>, vector<1x64x128xbf16>
    %66 = vector.shape_cast %65 : vector<1x64x128xbf16> to vector<64x128xbf16>
    %cst_64 = arith.constant dense<0.000000e+00> : vector<16x128xf32>
    %67 = tpu.matmul %64, %66, %cst_64 {dimension_numbers = #tpu.dot_dimension_numbers<[1], [0], [0], [1], [0, 0, 1, 1], [], []>} : vector<16x64xbf16>, vector<64x128xbf16>, vector<16x128xf32> -> vector<16x128xf32>
    %68 = arith.addf %60, %67 : vector<16x128xf32>
    %c0_65 = arith.constant 0 : index
    %c0_66 = arith.constant 0 : index
    %69 = vector.load %arg8[%c0_65, %c0_66] : memref<1x128xf32, #tpu.memory_space<vmem>>, vector<1x128xf32>
    %70 = vector.broadcast %69 : vector<1x128xf32> to vector<16x128xf32>
    %71 = arith.addf %68, %70 : vector<16x128xf32>
    %cst_67 = arith.constant 0.000000e+00 : f32
    %72 = vector.broadcast %cst_67 : f32 to vector<16x128xf32>
    %73 = arith.maximumf %71, %72 : vector<16x128xf32>
    %74 = arith.truncf %73 : vector<16x128xf32> to vector<16x128xbf16>
    %c0_68 = arith.constant 0 : index
    %c0_69 = arith.constant 0 : index
    %c0_70 = arith.constant 0 : index
    %75 = vector.load %arg9[%c0_68, %c0_69, %c0_70] : memref<2x8x16xbf16, #tpu.memory_space<vmem>>, vector<1x8x16xbf16>
    %76 = vector.shape_cast %75 : vector<1x8x16xbf16> to vector<8x16xbf16>
    %cst_71 = arith.constant dense<0.000000e+00> : vector<8x128xf32>
    %77 = tpu.matmul %76, %74, %cst_71 {dimension_numbers = #tpu.dot_dimension_numbers<[1], [0], [0], [1], [0, 0, 1, 1], [], []>} : vector<8x16xbf16>, vector<16x128xbf16>, vector<8x128xf32> -> vector<8x128xf32>
    %c1_72 = arith.constant 1 : index
    %c0_73 = arith.constant 0 : index
    %c0_74 = arith.constant 0 : index
    %78 = vector.load %arg9[%c1_72, %c0_73, %c0_74] : memref<2x8x16xbf16, #tpu.memory_space<vmem>>, vector<1x8x16xbf16>
    %79 = vector.shape_cast %78 : vector<1x8x16xbf16> to vector<8x16xbf16>
    %cst_75 = arith.constant dense<0.000000e+00> : vector<8x128xf32>
    %80 = tpu.matmul %79, %74, %cst_75 {dimension_numbers = #tpu.dot_dimension_numbers<[1], [0], [0], [1], [0, 0, 1, 1], [], []>} : vector<8x16xbf16>, vector<16x128xbf16>, vector<8x128xf32> -> vector<8x128xf32>
    %81 = arith.maximumf %77, %80 : vector<8x128xf32>
    %82 = arith.truncf %81 : vector<8x128xf32> to vector<8x128xbf16>
    %c0_76 = arith.constant 0 : index
    %c0_77 = arith.constant 0 : index
    %c0_78 = arith.constant 0 : index
    %83 = vector.load %arg10[%c0_76, %c0_77, %c0_78] : memref<2x128x64xbf16, #tpu.memory_space<vmem>>, vector<1x128x64xbf16>
    %84 = vector.shape_cast %83 : vector<1x128x64xbf16> to vector<128x64xbf16>
    %cst_79 = arith.constant dense<0.000000e+00> : vector<8x64xf32>
    %85 = tpu.matmul %82, %84, %cst_79 {dimension_numbers = #tpu.dot_dimension_numbers<[1], [0], [0], [1], [0, 0, 1, 1], [], []>} : vector<8x128xbf16>, vector<128x64xbf16>, vector<8x64xf32> -> vector<8x64xf32>
    %c1_80 = arith.constant 1 : index
    %c0_81 = arith.constant 0 : index
    %c0_82 = arith.constant 0 : index
    %86 = vector.load %arg10[%c1_80, %c0_81, %c0_82] : memref<2x128x64xbf16, #tpu.memory_space<vmem>>, vector<1x128x64xbf16>
    %87 = vector.shape_cast %86 : vector<1x128x64xbf16> to vector<128x64xbf16>
    %cst_83 = arith.constant dense<0.000000e+00> : vector<8x64xf32>
    %88 = tpu.matmul %82, %87, %cst_83 {dimension_numbers = #tpu.dot_dimension_numbers<[1], [0], [0], [1], [0, 0, 1, 1], [], []>} : vector<8x128xbf16>, vector<128x64xbf16>, vector<8x64xf32> -> vector<8x64xf32>
    %89 = arith.maximumf %85, %88 : vector<8x64xf32>
    %90 = arith.truncf %89 : vector<8x64xf32> to vector<8x64xbf16>
    %c0_84 = arith.constant 0 : index
    %c0_85 = arith.constant 0 : index
    %c0_86 = arith.constant 0 : index
    %91 = vector.load %arg11[%c0_84, %c0_85, %c0_86] : memref<4x2x8xbf16, #tpu.memory_space<vmem>>, vector<1x2x8xbf16>
    %92 = vector.shape_cast %91 : vector<1x2x8xbf16> to vector<2x8xbf16>
    %cst_87 = arith.constant dense<0.000000e+00> : vector<2x64xf32>
    %93 = tpu.matmul %92, %90, %cst_87 {dimension_numbers = #tpu.dot_dimension_numbers<[1], [0], [0], [1], [0, 0, 1, 1], [], []>} : vector<2x8xbf16>, vector<8x64xbf16>, vector<2x64xf32> -> vector<2x64xf32>
    %94 = arith.truncf %93 : vector<2x64xf32> to vector<2x64xbf16>
    %c0_88 = arith.constant 0 : index
    %c0_89 = arith.constant 0 : index
    %c0_90 = arith.constant 0 : index
    %95 = vector.load %arg12[%c0_88, %c0_89, %c0_90] : memref<4x64x32xbf16, #tpu.memory_space<vmem>>, vector<1x64x32xbf16>
    %96 = vector.shape_cast %95 : vector<1x64x32xbf16> to vector<64x32xbf16>
    %cst_91 = arith.constant dense<0.000000e+00> : vector<2x32xf32>
    %97 = tpu.matmul %94, %96, %cst_91 {dimension_numbers = #tpu.dot_dimension_numbers<[1], [0], [0], [1], [0, 0, 1, 1], [], []>} : vector<2x64xbf16>, vector<64x32xbf16>, vector<2x32xf32> -> vector<2x32xf32>
    %c1_92 = arith.constant 1 : index
    %c0_93 = arith.constant 0 : index
    %c0_94 = arith.constant 0 : index
    %98 = vector.load %arg11[%c1_92, %c0_93, %c0_94] : memref<4x2x8xbf16, #tpu.memory_space<vmem>>, vector<1x2x8xbf16>
    %99 = vector.shape_cast %98 : vector<1x2x8xbf16> to vector<2x8xbf16>
    %cst_95 = arith.constant dense<0.000000e+00> : vector<2x64xf32>
    %100 = tpu.matmul %99, %90, %cst_95 {dimension_numbers = #tpu.dot_dimension_numbers<[1], [0], [0], [1], [0, 0, 1, 1], [], []>} : vector<2x8xbf16>, vector<8x64xbf16>, vector<2x64xf32> -> vector<2x64xf32>
    %101 = arith.truncf %100 : vector<2x64xf32> to vector<2x64xbf16>
    %c1_96 = arith.constant 1 : index
    %c0_97 = arith.constant 0 : index
    %c0_98 = arith.constant 0 : index
    %102 = vector.load %arg12[%c1_96, %c0_97, %c0_98] : memref<4x64x32xbf16, #tpu.memory_space<vmem>>, vector<1x64x32xbf16>
    %103 = vector.shape_cast %102 : vector<1x64x32xbf16> to vector<64x32xbf16>
    %cst_99 = arith.constant dense<0.000000e+00> : vector<2x32xf32>
    %104 = tpu.matmul %101, %103, %cst_99 {dimension_numbers = #tpu.dot_dimension_numbers<[1], [0], [0], [1], [0, 0, 1, 1], [], []>} : vector<2x64xbf16>, vector<64x32xbf16>, vector<2x32xf32> -> vector<2x32xf32>
    %105 = arith.addf %97, %104 : vector<2x32xf32>
    %c2_100 = arith.constant 2 : index
    %c0_101 = arith.constant 0 : index
    %c0_102 = arith.constant 0 : index
    %106 = vector.load %arg11[%c2_100, %c0_101, %c0_102] : memref<4x2x8xbf16, #tpu.memory_space<vmem>>, vector<1x2x8xbf16>
    %107 = vector.shape_cast %106 : vector<1x2x8xbf16> to vector<2x8xbf16>
    %cst_103 = arith.constant dense<0.000000e+00> : vector<2x64xf32>
    %108 = tpu.matmul %107, %90, %cst_103 {dimension_numbers = #tpu.dot_dimension_numbers<[1], [0], [0], [1], [0, 0, 1, 1], [], []>} : vector<2x8xbf16>, vector<8x64xbf16>, vector<2x64xf32> -> vector<2x64xf32>
    %109 = arith.truncf %108 : vector<2x64xf32> to vector<2x64xbf16>
    %c2_104 = arith.constant 2 : index
    %c0_105 = arith.constant 0 : index
    %c0_106 = arith.constant 0 : index
    %110 = vector.load %arg12[%c2_104, %c0_105, %c0_106] : memref<4x64x32xbf16, #tpu.memory_space<vmem>>, vector<1x64x32xbf16>
    %111 = vector.shape_cast %110 : vector<1x64x32xbf16> to vector<64x32xbf16>
    %cst_107 = arith.constant dense<0.000000e+00> : vector<2x32xf32>
    %112 = tpu.matmul %109, %111, %cst_107 {dimension_numbers = #tpu.dot_dimension_numbers<[1], [0], [0], [1], [0, 0, 1, 1], [], []>} : vector<2x64xbf16>, vector<64x32xbf16>, vector<2x32xf32> -> vector<2x32xf32>
    %113 = arith.addf %105, %112 : vector<2x32xf32>
    %c3 = arith.constant 3 : index
    %c0_108 = arith.constant 0 : index
    %c0_109 = arith.constant 0 : index
    %114 = vector.load %arg11[%c3, %c0_108, %c0_109] : memref<4x2x8xbf16, #tpu.memory_space<vmem>>, vector<1x2x8xbf16>
    %115 = vector.shape_cast %114 : vector<1x2x8xbf16> to vector<2x8xbf16>
    %cst_110 = arith.constant dense<0.000000e+00> : vector<2x64xf32>
    %116 = tpu.matmul %115, %90, %cst_110 {dimension_numbers = #tpu.dot_dimension_numbers<[1], [0], [0], [1], [0, 0, 1, 1], [], []>} : vector<2x8xbf16>, vector<8x64xbf16>, vector<2x64xf32> -> vector<2x64xf32>
    %117 = arith.truncf %116 : vector<2x64xf32> to vector<2x64xbf16>
    %c3_111 = arith.constant 3 : index
    %c0_112 = arith.constant 0 : index
    %c0_113 = arith.constant 0 : index
    %118 = vector.load %arg12[%c3_111, %c0_112, %c0_113] : memref<4x64x32xbf16, #tpu.memory_space<vmem>>, vector<1x64x32xbf16>
    %119 = vector.shape_cast %118 : vector<1x64x32xbf16> to vector<64x32xbf16>
    %cst_114 = arith.constant dense<0.000000e+00> : vector<2x32xf32>
    %120 = tpu.matmul %117, %119, %cst_114 {dimension_numbers = #tpu.dot_dimension_numbers<[1], [0], [0], [1], [0, 0, 1, 1], [], []>} : vector<2x64xbf16>, vector<64x32xbf16>, vector<2x32xf32> -> vector<2x32xf32>
    %121 = arith.addf %113, %120 : vector<2x32xf32>
    %c0_115 = arith.constant 0 : index
    %c0_116 = arith.constant 0 : index
    %122 = vector.load %arg13[%c0_115, %c0_116] : memref<1x32xf32, #tpu.memory_space<vmem>>, vector<1x32xf32>
    %123 = vector.broadcast %122 : vector<1x32xf32> to vector<2x32xf32>
    %124 = arith.addf %121, %123 : vector<2x32xf32>
    %125 = arith.truncf %124 : vector<2x32xf32> to vector<2x32xbf16>
    %c0_117 = arith.constant 0 : index
    %c0_118 = arith.constant 0 : index
    %c0_119 = arith.constant 0 : index
    %126 = vector.load %arg14[%c0_117, %c0_118, %c0_119] : memref<1x2x2xbf16, #tpu.memory_space<vmem>>, vector<1x2x2xbf16>
    %127 = vector.shape_cast %126 : vector<1x2x2xbf16> to vector<2x2xbf16>
    %cst_120 = arith.constant dense<0.000000e+00> : vector<2x32xf32>
    %128 = tpu.matmul %127, %125, %cst_120 {dimension_numbers = #tpu.dot_dimension_numbers<[1], [0], [0], [1], [0, 0, 1, 1], [], []>} : vector<2x2xbf16>, vector<2x32xbf16>, vector<2x32xf32> -> vector<2x32xf32>
    %129 = arith.truncf %128 : vector<2x32xf32> to vector<2x32xbf16>
    %c0_121 = arith.constant 0 : index
    %c0_122 = arith.constant 0 : index
    %c0_123 = arith.constant 0 : index
    %130 = vector.load %arg15[%c0_121, %c0_122, %c0_123] : memref<1x32x10xbf16, #tpu.memory_space<vmem>>, vector<1x32x10xbf16>
    %131 = vector.shape_cast %130 : vector<1x32x10xbf16> to vector<32x10xbf16>
    %cst_124 = arith.constant dense<0.000000e+00> : vector<2x10xf32>
    %132 = tpu.matmul %129, %131, %cst_124 {dimension_numbers = #tpu.dot_dimension_numbers<[1], [0], [0], [1], [0, 0, 1, 1], [], []>} : vector<2x32xbf16>, vector<32x10xbf16>, vector<2x10xf32> -> vector<2x10xf32>
    %c0_125 = arith.constant 0 : index
    %c0_126 = arith.constant 0 : index
    %133 = vector.load %arg16[%c0_125, %c0_126] : memref<1x10xf32, #tpu.memory_space<vmem>>, vector<1x10xf32>
    %134 = vector.broadcast %133 : vector<1x10xf32> to vector<2x10xf32>
    %135 = arith.addf %132, %134 : vector<2x10xf32>
    %c0_127 = arith.constant 0 : index
    %c0_128 = arith.constant 0 : index
    %136 = vector.load %arg17[%c0_127, %c0_128] : memref<2x2xf32, #tpu.memory_space<vmem>>, vector<2x2xf32>
    %cst_129 = arith.constant dense<0.000000e+00> : vector<2x10xf32>
    %137 = tpu.matmul %136, %135, %cst_129 {dimension_numbers = #tpu.dot_dimension_numbers<[1], [0], [0], [1], [0, 0, 1, 1], [], []>} : vector<2x2xf32>, vector<2x10xf32>, vector<2x10xf32> -> vector<2x10xf32>
    %c0_130 = arith.constant 0 : index
    %c0_131 = arith.constant 0 : index
    %138 = vector.load %arg18[%c0_130, %c0_131] : memref<10x10xf32, #tpu.memory_space<vmem>>, vector<10x10xf32>
    %cst_132 = arith.constant dense<0.000000e+00> : vector<2x10xf32>
    %139 = tpu.matmul %137, %138, %cst_132 {dimension_numbers = #tpu.dot_dimension_numbers<[1], [0], [0], [1], [0, 0, 1, 1], [], []>} : vector<2x10xf32>, vector<10x10xf32>, vector<2x10xf32> -> vector<2x10xf32>
    %c0_133 = arith.constant 0 : index
    %c0_134 = arith.constant 0 : index
    %140 = vector.load %arg19[%c0_133, %c0_134] : memref<2x10xf32, #tpu.memory_space<vmem>>, vector<2x10xf32>
    tpu.vector_store %arg19[%c0_133, %c0_134], %139 {strides = array<i32>} : memref<2x10xf32, #tpu.memory_space<vmem>>, vector<2x10xf32>,
    return
  }
}

</mosaic_0001>

<bundles_post_ra>
// kernel: tpu_custom_call.1
= control target key start
LH: loop header
LB: loop body
LE: loop exit
PB: predicated region body
PF: predicated region fallthrough
CT: control target
= control target key end

     0   :  { %s3797_s0 = inlined_call_operand.vmem [shape: bf16[32,64], index: 0, kind: input, shape index: {}]   ;;  %s3798_s1 = inlined_call_operand.vmem [shape: bf16[3,32,32], index: 1, kind: input, shape index: {}]   ;;  %s3799_s2 = inlined_call_operand.vmem [shape: bf16[3,64,128], index: 2, kind: input, shape index: {}]   ;;  %s3800_s3 = inlined_call_operand.vmem [shape: f32[1,128], index: 3, kind: input, shape index: {}]   ;;  %s3801_s4 = inlined_call_operand.vmem [shape: bf16[2,16,32], index: 4, kind: input, shape index: {}]   ;;  %s3802_s5 = inlined_call_operand.vmem [shape: bf16[2,128,64], index: 5, kind: input, shape index: {}]   ;;  %s3803_s6 = inlined_call_operand.vmem [shape: bf16[3,16,16], index: 6, kind: input, shape index: {}]   ;;  %s3804_s7 = inlined_call_operand.vmem [shape: bf16[3,64,128], index: 7, kind: input, shape index: {}]   ;;  %s3805_s8 = inlined_call_operand.vmem [shape: f32[1,128], index: 8, kind: input, shape index: {}]   ;;  %s3806_s9 = inlined_call_operand.vmem [shape: bf16[2,8,16], index: 9, kind: input, shape index: {}]   ;;  %s3807_s10 = inlined_call_operand.vmem [shape: bf16[2,128,64], index: 10, kind: input, shape index: {}]   ;;  %s3808_s11 = inlined_call_operand.vmem [shape: bf16[4,2,8], index: 11, kind: input, shape index: {}]   ;;  %s3809_s12 = inlined_call_operand.vmem [shape: bf16[4,64,32], index: 12, kind: input, shape index: {}]   ;;  %s3810_s13 = inlined_call_operand.vmem [shape: f32[1,32], index: 13, kind: input, shape index: {}]   ;;  %s3811_s14 = inlined_call_operand.vmem [shape: bf16[1,2,2], index: 14, kind: input, shape index: {}]   ;;  %s3812_s15 = inlined_call_operand.vmem [shape: bf16[1,32,10], index: 15, kind: input, shape index: {}]   ;;  %s3813_s16 = inlined_call_operand.vmem [shape: f32[1,10], index: 16, kind: input, shape index: {}]   ;;  %s3814_s17 = inlined_call_operand.vmem [shape: f32[2,2], index: 17, kind: input, shape index: {}]   ;;  %s3815_s18 = inlined_call_operand.vmem [shape: f32[10,10], index: 18, kind: input, shape index: {}]   ;;  %s3816_s19 = inlined_call_operand.hbm [shape: f32[2,10], index: 19, kind: output, shape index: {}]  }
   0x1   :  { %3820 = sst [smem:[#allocation5_spill]] %s3797_s0 }
   0x2   :  { %3821 = sst [smem:[#allocation6_spill]] %s3798_s1 }
   0x3   :  { %3822 = sst [smem:[#allocation7_spill]] %s3799_s2 }
   0x4   :  { %3823 = sst [smem:[#allocation8_spill]] %s3800_s3 }
   0x5   :  { %s3824_s20 = sld [smem:[#allocation5_spill]]  ;;  %vm94_vm0 = vcmask 261120   ;;  %s3825_s23 = sld [smem:[#allocation6_spill]] }
   0x6   :  { %s3826_s21 = sld [smem:[#allocation7_spill]] }
   0xb   :  { %v3102_v0 = vld [vmem:[%s3824_s20] sm:$0xff]   ;;  %v3103_v1 = vld [vmem:[%s3824_s20 + $0x8] sm:$0xff]   ;;  %v3104_v2 = vld [vmem:[%s3825_s23 + $0x10] sm:$0xff]  }
   0xc   :  { %2773 = vmatprep.subr.bf16.mxu1 %v3102_v0  ;;  %2765 = vmatprep.subr.bf16.mxu0 %v3102_v0  ;;  %v3106_v3 = vld [vmem:[%s3825_s23] sm:$0xff]   ;;  %v3105_v4 = vld [vmem:[%s3825_s23 + $0x18] sm:$0xff]   ;;  %v3107_v5 = vld [vmem:[%s3825_s23 + $0x8] sm:$0xff]  }
   0xd   :  { %2774 = vmatpush3.bf16.msra.mxu1 %v3102_v0  ;;  %2766 = vmatpush3.bf16.msra.mxu0 %v3102_v0  ;;  %v3108_v6 = vld [vmem:[%s3825_s23 + $0x20] sm:$0xff]   ;;  %v3111_v8 = vld [vmem:[%s3826_s21 + $0x28] sm:$0xff]   ;;  %v3112_v10 = vld [vmem:[%s3826_s21 + $0x30] sm:$0xff]  }
   0xe   :  { %2775 = vmatprep.subr.bf16.mxu1 %v3103_v1  ;;  %2777 = vmatprep.mubr.msk.bf16.mxu1 %vm94_vm0, %v3104_v2  ;;  %v3110_v7 = vld [vmem:[%s3826_s21 + $0x20] sm:$0xff]   ;;  %v3109_v9 = vld [vmem:[%s3825_s23 + $0x28] sm:$0xff]  }
   0xf   :  { %2767 = vmatprep.subr.bf16.mxu0 %v3103_v1  ;;  %2769 = vmatprep.mubr.msk.bf16.mxu0 %vm94_vm0, %v3106_v3 }
  0x11   :  { %2776 = vmatpush3.bf16.msra.mxu1 %v3103_v1  ;;  %2768 = vmatpush3.bf16.msra.mxu0 %v3103_v1 }
  0x12   :  { %2805 = vmatprep.subr.bf16.mxu1 %v3102_v0  ;;  %2781 = vmatprep.subr.bf16.mxu0 %v3110_v7 }
  0x14   :  { %2778 = vmatmul.mubr.msk.bf16.vlgmr.msra.gmra.mrb[0].mxu1 %vm94_vm0, %v3105_v4  ;;  %2770 = vmatmul.mubr.msk.bf16.vlgmr.msra.gmra.mrb[0].mxu0 %vm94_vm0, %v3107_v5 }
  0x15   :  { %2806 = vmatpush3.bf16.msra.mxu1 %v3102_v0  ;;  %2809 = vmatprep.mubr.msk.bf16.mxu1 %vm94_vm0, %v3108_v6 }
  0x16   :  { %2807 = vmatprep.subr.bf16.mxu1 %v3103_v1  ;;  %2782 = vmatpush3.bf16.msra.mxu0 %v3110_v7 }
  0x17   :  { %2783 = vmatprep.subr.bf16.mxu0 %v3111_v8 }
  0x19   :  { %2808 = vmatpush3.bf16.msra.mxu1 %v3103_v1 }
  0x1a   :  { %2784 = vmatpush3.bf16.msra.mxu0 %v3111_v8 }
  0x1b   :  { %2785 = vmatprep.subr.bf16.mxu0 %v3112_v10 }
  0x1c   :  { %2810 = vmatmul.mubr.msk.bf16.vlgmr.msra.gmra.mrb[4].mxu1 %vm94_vm0, %v3109_v9 }
  0x1e   :  { %2786 = vmatpush3.bf16.msra.mxu0 %v3112_v10 }
  0x1f   :  { %24 = vsyncpa [#allocation3], 0  ;;  %v3113_v11 = vld [vmem:[%s3826_s21 + $0x38] sm:$0xff]   ;;  %v3114_v12 = vld [vmem:[%s3826_s21] sm:$0xff]   ;;  %vm265_vm1 = vcmask 523264   ;;  %v3213_v38 = vmov 0.0  }
  0x20   :  { %2787 = vmatprep.subr.bf16.mxu0 %v3113_v11  ;;  %v3115_v25 = vld [vmem:[%s3826_s21 + $0x8] sm:$0xff]   ;;  %v3116_v27 = vld [vmem:[%s3826_s21 + $0x10] sm:$0xff]   ;;  %v3117_v33 = vld [vmem:[%s3826_s21 + $0x18] sm:$0xff]   ;;  %2825 = vmatprep.subr.bf16.mxu1 %v3213_v38  ;;  %vm3214_vm2 = vmmov 0   ;;  %s3827_s3 = sld [smem:[#allocation8_spill]]  ;;  %vm908_vm3 = vcmask 130048  }
  0x21   :  { %v3118_v34 = vld [vmem:[%s3826_s21 + $0x40] sm:$0xff]   ;;  %v3119_v35 = vld [vmem:[%s3826_s21 + $0x48] sm:$0xff]   ;;  %v3120_v36 = vld [vmem:[%s3826_s21 + $0x50] sm:$0xff]   ;;  %2829 = vmatprep.mubr.msk.bf16.mxu1 %vm3214_vm2, %v3213_v38  ;;  %vm1611_vm4 = vcmask 1043456   ;;  %vm1607_vm5 = vcmask 64512   ;;  %vm2113_vm6 = vcmask 1040384  }
  0x22   :  { %2788 = vmatpush3.bf16.msra.mxu0 %v3113_v11  ;;  %v3121_v37 = vld [vmem:[%s3826_s21 + $0x58] sm:$0xff]   ;;  %v3125_v39 = vld [vmem:[%s3802_s5 + $0x40] sm:$0xff]   ;;  %v3127_v40 = vld [vmem:[%s3802_s5 + $0x48] sm:$0xff]   ;;  %vm2109_vm7 = vcmask 15360   ;;  %vm2228_vm8 = vcmask 1041408   ;;  %vm3216_vm9 = vmmov 1  }
  0x23   :  { %2793 = vmatprep.subr.bf16.mxu0 %v3114_v12  ;;  %v3129_v41 = vld [vmem:[%s3802_s5 + $0x50] sm:$0xff]   ;;  %v3131_v42 = vld [vmem:[%s3802_s5 + $0x58] sm:$0xff]   ;;  %v3122_v58 = vld [vmem:[%s3801_s4] sm:$0xff]   ;;  %vm2304_vm11 = vcmask 80896   ;;  %vm2381_vm12 = vcmask 74752  }
  0x24   :  { %v3123_v59 = vld [vmem:[%s3801_s4 + $0x8] sm:$0xff]   ;;  %v3124_v60 = vld [vmem:[%s3802_s5] sm:$0xff]   ;;  %v3128_v62 = vld [vmem:[%s3802_s5 + $0x10] sm:$0xff]  }
  0x25   :  { %v3126_v61 = vld [vmem:[%s3802_s5 + $0x8] sm:$0xff]   ;;  %v3130_v63 = vld [vmem:[%s3802_s5 + $0x18] sm:$0xff]   ;;  %v3132_v0 = vld [vmem:[%s3802_s5 + $0x20] sm:$0xff]  }
  0x26   :  { %v2453_v43 = vld [vmem:[%s3827_s3] ss:$0 sm:$0xff]  ;;  %v3134_v2 = vld [vmem:[%s3802_s5 + $0x28] sm:$0xff]   ;;  %v3136_v4 = vld [vmem:[%s3802_s5 + $0x30] sm:$0xff]  }
  0x27   :  { %v3133_v1 = vld [vmem:[%s3802_s5 + $0x60] sm:$0xff]   ;;  %v3135_v3 = vld [vmem:[%s3802_s5 + $0x68] sm:$0xff]   ;;  %v3137_v5 = vld [vmem:[%s3802_s5 + $0x70] sm:$0xff]  }
  0x28   :  { %v3138_v6 = vld [vmem:[%s3802_s5 + $0x38] sm:$0xff]   ;;  %vm3087_vm10 = vmpackc.low %vm2228_vm8, %vm3216_vm9 }
  0x29   :  { %v3139_v7 = vld [vmem:[%s3802_s5 + $0x78] sm:$0xff]  }
  0xe7   :  { %v2779_v13 = vpop.f32.mrb[0].mxu1  ;;  %v2771_v14 = vpop.f32.mrb[0].mxu0 }
  0xe8   :  { %v215_v15 = vpop.f32.mrb[1].mxu1  ;;  %v135_v16 = vpop.f32.mrb[1].mxu0 }
  0xe9   :  { %v2780_v17 = vpop.f32.mrb[2].mxu1  ;;  %v2772_v18 = vpop.f32.mrb[2].mxu0 }
  0xea   :  { %v231_v19 = vpack.c.bf16 %v2780_v17, %v2779_v13  ;;  %v218_v20 = vpop.f32.mrb[3].mxu1  ;;  %v151_v21 = vpack.c.bf16 %v2772_v18, %v2771_v14  ;;  %v138_v22 = vpop.f32.mrb[3].mxu0 }
  0xeb   :  { %v230_v23 = vpack.c.bf16 %v218_v20, %v215_v15  ;;  %v150_v24 = vpack.c.bf16 %v138_v22, %v135_v16  ;;  %v3143_v20 = vld [vmem:[%s3804_s7 + $0x8] sm:$0xff]  }
  0xed   :  { %2789 = vmatprep.mubr.msk.bf16.mxu0 %vm265_vm1, %v230_v23 }
  0xee   :  { %2790 = vmatmul.mubr.msk.bf16.vlgmr.msra.gmra.mrb[4].mxu0 %vm265_vm1, %v231_v19  ;;  %v3142_v19 = vld [vmem:[%s3804_s7] sm:$0xff]  }
  0xef   :  { %2794 = vmatpush3.bf16.msra.mxu0 %v3114_v12  ;;  %2801 = vmatprep.mubr.msk.bf16.mxu0 %vm265_vm1, %v150_v24  ;;  %v2811_v26 = vpop.f32.mrb[4].mxu1 }
  0xf0   :  { %2795 = vmatprep.subr.bf16.mxu0 %v3115_v25  ;;  %v455_v28 = vpop.f32.mrb[5].mxu1 }
  0xf1   :  { %v2812_v29 = vpop.f32.mrb[6].mxu1 }
  0xf2   :  { %v471_v30 = vpack.c.bf16 %v2812_v29, %v2811_v26  ;;  %v458_v31 = vpop.f32.mrb[7].mxu1 }
  0xf3   :  { %2796 = vmatpush3.bf16.msra.mxu0 %v3115_v25  ;;  %v470_v32 = vpack.c.bf16 %v458_v31, %v455_v28 }
  0xf4   :  { %2797 = vmatprep.subr.bf16.mxu0 %v3116_v27 }
  0xf7   :  { %2798 = vmatpush3.bf16.msra.mxu0 %v3116_v27 }
  0xf8   :  { %2799 = vmatprep.subr.bf16.mxu0 %v3117_v33 }
  0xfb   :  { %2800 = vmatpush3.bf16.msra.mxu0 %v3117_v33  ;;  %v3140_v33 = vld [vmem:[%s3803_s6] sm:$0xff]  }
  0xfc   :  { %2813 = vmatprep.subr.bf16.mxu0 %v3118_v34 }
  0xfe   :  { %2802 = vmatmul.mubr.msk.bf16.vlgmr.msra.gmra.mrb[4].mxu0 %vm265_vm1, %v151_v21  ;;  %v3145_v21 = vld [vmem:[%s3804_s7 + $0x10] sm:$0xff]  }
  0xff   :  { %2814 = vmatpush3.bf16.msra.mxu0 %v3118_v34  ;;  %2821 = vmatprep.mubr.msk.bf16.mxu0 %vm265_vm1, %v470_v32  ;;  %v3141_v34 = vld [vmem:[%s3803_s6 + $0x8] sm:$0xff]  }
 0x100   :  { %2815 = vmatprep.subr.bf16.mxu0 %v3119_v35 }
 0x103   :  { %2816 = vmatpush3.bf16.msra.mxu0 %v3119_v35  ;;  %v3144_v35 = vld [vmem:[%s3804_s7 + $0x20] sm:$0xff]  }
 0x104   :  { %2817 = vmatprep.subr.bf16.mxu0 %v3120_v36 }
 0x107   :  { %2818 = vmatpush3.bf16.msra.mxu0 %v3120_v36  ;;  %v3146_v36 = vld [vmem:[%s3804_s7 + $0x28] sm:$0xff]  }
 0x108   :  { %2819 = vmatprep.subr.bf16.mxu0 %v3121_v37 }
 0x10b   :  { %2820 = vmatpush3.bf16.msra.mxu0 %v3121_v37  ;;  %v3147_v37 = vld [vmem:[%s3804_s7 + $0x18] sm:$0xff]  }
 0x10c   :  { %2861 = vmatprep.subr.bf16.mxu0 %v3213_v38 }
 0x10e   :  { %2822 = vmatmul.mubr.msk.bf16.vlgmr.msra.gmra.mrb[4].mxu0 %vm265_vm1, %v471_v30 }
 0x10f   :  { %2877 = vmatprep.mubr.msk.bf16.mxu0 %vm3214_vm2, %v3213_v38  ;;  %2862 = vmatpush3.bf16.msra.mxu0 %v3125_v39  ;;  %v3148_v39 = vld [vmem:[%s3804_s7 + $0x30] sm:$0xff]  }
 0x110   :  { %2863 = vmatprep.subr.bf16.mxu0 %v3213_v38 }
 0x113   :  { %2864 = vmatpush3.bf16.msra.mxu0 %v3127_v40  ;;  %v3149_v40 = vld [vmem:[%s3804_s7 + $0x38] sm:$0xff]  }
 0x114   :  { %2865 = vmatprep.subr.bf16.mxu0 %v3213_v38 }
 0x117   :  { %2866 = vmatpush3.bf16.msra.mxu0 %v3129_v41 }
 0x118   :  { %2867 = vmatprep.subr.bf16.mxu0 %v3213_v38 }
 0x11b   :  { %2868 = vmatpush3.bf16.msra.mxu0 %v3131_v42 }
 0x11c   :  { %2869 = vmatprep.subr.bf16.mxu0 %v3213_v38 }
 0x11f   :  { %2870 = vmatpush3.bf16.msra.mxu0 %v3133_v1 }
 0x120   :  { %2871 = vmatprep.subr.bf16.mxu0 %v3213_v38 }
 0x123   :  { %2872 = vmatpush3.bf16.msra.mxu0 %v3135_v3 }
 0x124   :  { %2873 = vmatprep.subr.bf16.mxu0 %v3213_v38 }
 0x127   :  { %2874 = vmatpush3.bf16.msra.mxu0 %v3137_v5 }
 0x128   :  { %2875 = vmatprep.subr.bf16.mxu0 %v3213_v38 }
 0x12b   :  { %2876 = vmatpush3.bf16.msra.mxu0 %v3139_v7  ;;  %v3155_v7 = vld [vmem:[%s3807_s10] sm:$0xff]  }
 0x12c   :  { %2905 = vmatprep.subr.bf16.mxu0 %v3213_v38 }
 0x1e1   :  { %v2823_v44 = vpop.f32.mrb[4].mxu0 }
 0x1e2   :  { %v573_v45 = vadd.f32 %v2823_v44, %v2453_v43  ;;  %v545_v46 = vpop.f32.mrb[5].mxu0 }
 0x1e3   :  { %v571_v47 = vadd.f32 %v2453_v43, %v545_v46  ;;  %v2824_v48 = vpop.f32.mrb[6].mxu0 }
 0x1e4   :  { %v574_v49 = vadd.f32 %v2824_v48, %v2453_v43  ;;  %v548_v50 = vpop.f32.mrb[7].mxu0  ;;  %v577_v52 = vmax.f32 %v573_v45, 0.0 }
 0x1e5   :  { %v572_v51 = vadd.f32 %v2453_v43, %v548_v50  ;;  %v575_v54 = vmax.f32 %v571_v47, 0.0 }
 0x1e6   :  { %v578_v53 = vmax.f32 %v574_v49, 0.0 }
 0x1e7   :  { %v576_v55 = vmax.f32 %v572_v51, 0.0  ;;  %v3150_v51 = vld [vmem:[%s3803_s6 + $0x10] sm:$0xff]  }
 0x1e8   :  { %v580_v56 = vpack.c.bf16 %v578_v53, %v577_v52  ;;  %v3151_v52 = vld [vmem:[%s3804_s7 + $0x40] sm:$0xff]   ;;  %v3152_v53 = vld [vmem:[%s3804_s7 + $0x48] sm:$0xff]  }
 0x1e9   :  { %v579_v57 = vpack.c.bf16 %v576_v55, %v575_v54  ;;  %v3153_v54 = vld [vmem:[%s3804_s7 + $0x50] sm:$0xff]   ;;  %v3154_v55 = vld [vmem:[%s3804_s7 + $0x58] sm:$0xff]  }
 0x1eb   :  { %2826 = vmatpush3.bf16.msra.mxu1 %v579_v57 }
 0x1ec   :  { %2827 = vmatprep.subr.bf16.mxu1 %v3213_v38 }
 0x1ef   :  { %2828 = vmatpush3.bf16.msra.mxu1 %v580_v56 }
 0x1f0   :  { %2833 = vmatprep.subr.bf16.mxu1 %v3213_v38 }
 0x1f2   :  { %2830 = vmatmul.mubr.msk.bf16.vlgmr.msra.gmra.mrb[8].mxu1 %vm94_vm0, %v3122_v58 }
 0x1f3   :  { %2834 = vmatpush3.bf16.msra.mxu1 %v579_v57  ;;  %2837 = vmatprep.mubr.msk.bf16.mxu1 %vm3214_vm2, %v3213_v38 }
 0x1f4   :  { %2835 = vmatprep.subr.bf16.mxu1 %v3213_v38 }
 0x1f7   :  { %2836 = vmatpush3.bf16.msra.mxu1 %v580_v56 }
 0x1f8   :  { %2841 = vmatprep.subr.bf16.mxu1 %v3213_v38 }
 0x1fa   :  { %2838 = vmatmul.mubr.msk.bf16.vlgmr.msra.gmra.mrb[12].mxu1 %vm94_vm0, %v3123_v59 }
 0x1fb   :  { %2842 = vmatpush3.bf16.msra.mxu1 %v3124_v60  ;;  %2857 = vmatprep.mubr.msk.bf16.mxu1 %vm3214_vm2, %v3213_v38 }
 0x1fc   :  { %2843 = vmatprep.subr.bf16.mxu1 %v3213_v38 }
 0x1ff   :  { %2844 = vmatpush3.bf16.msra.mxu1 %v3126_v61 }
 0x200   :  { %2845 = vmatprep.subr.bf16.mxu1 %v3213_v38 }
 0x203   :  { %2846 = vmatpush3.bf16.msra.mxu1 %v3128_v62 }
 0x204   :  { %2847 = vmatprep.subr.bf16.mxu1 %v3213_v38 }
 0x207   :  { %2848 = vmatpush3.bf16.msra.mxu1 %v3130_v63 }
 0x208   :  { %2849 = vmatprep.subr.bf16.mxu1 %v3213_v38 }
 0x20b   :  { %2850 = vmatpush3.bf16.msra.mxu1 %v3132_v0 }
 0x20c   :  { %2851 = vmatprep.subr.bf16.mxu1 %v3213_v38 }
 0x20f   :  { %2852 = vmatpush3.bf16.msra.mxu1 %v3134_v2 }
 0x210   :  { %2853 = vmatprep.subr.bf16.mxu1 %v3213_v38 }
 0x213   :  { %2854 = vmatpush3.bf16.msra.mxu1 %v3136_v4 }
 0x214   :  { %2855 = vmatprep.subr.bf16.mxu1 %v3213_v38 }
 0x217   :  { %2856 = vmatpush3.bf16.msra.mxu1 %v3138_v6 }
 0x218   :  { %2881 = vmatprep.subr.bf16.mxu1 %v3213_v38 }
 0x2c5   :  { %v625_v8 = vpop.f32.mrb[8].mxu1 }
 0x2c6   :  { %v2831_v9 = vpop.f32.mrb[9].mxu1 }
 0x2c7   :  { %v628_v10 = vpop.f32.mrb[10].mxu1  ;;  %v3159_v9 = vld [vmem:[%s3807_s10 + $0x10] sm:$0xff]  }
 0x2c8   :  { %v2832_v11 = vpop.f32.mrb[11].mxu1 }
 0x2c9   :  { %v3163_v11 = vld [vmem:[%s3807_s10 + $0x20] sm:$0xff]  }
 0x2cd   :  { %v677_v12 = vpop.f32.mrb[12].mxu1 }
 0x2ce   :  { %v684_v13 = vmax.f32 %v625_v8, %v677_v12  ;;  %v2839_v14 = vpop.f32.mrb[13].mxu1  ;;  %v3157_v8 = vld [vmem:[%s3807_s10 + $0x8] sm:$0xff]  }
 0x2cf   :  { %v680_v15 = vpop.f32.mrb[14].mxu1 }
 0x2d0   :  { %v685_v16 = vmax.f32 %v628_v10, %v680_v15  ;;  %v2840_v17 = vpop.f32.mrb[15].mxu1  ;;  %v3161_v10 = vld [vmem:[%s3807_s10 + $0x18] sm:$0xff]  }
 0x2d2   :  { %v686_v18 = vpack.c.bf16 %v685_v16, %v684_v13  ;;  %v2533_v13 = vld [vmem:[%s3805_s8] ss:$0 sm:$0xff] }
 0x2d4   :  { %2858 = vmatmul.mubr.bf16.vlgmr.msra.gmra.mrb[16].mxu1 %v686_v18  ;;  %2878 = vmatmul.mubr.bf16.vlgmr.msra.gmra.mrb[8].mxu0 %v686_v18 }
 0x2d5   :  { %2883 = vmatprep.mubr.msk.bf16.mxu1 %vm3214_vm2, %v3213_v38  ;;  %2913 = vmatprep.mubr.msk.bf16.mxu0 %vm3214_vm2, %v3213_v38 }
 0x2d6   :  { %2906 = vmatpush3.bf16.msra.mxu0 %v3142_v19 }
 0x2d7   :  { %2907 = vmatprep.subr.bf16.mxu0 %v3213_v38 }
 0x2da   :  { %2908 = vmatpush3.bf16.msra.mxu0 %v3143_v20 }
 0x2db   :  { %2909 = vmatprep.subr.bf16.mxu0 %v3213_v38 }
 0x2de   :  { %2910 = vmatpush3.bf16.msra.mxu0 %v3145_v21 }
 0x2df   :  { %2911 = vmatprep.subr.bf16.mxu0 %v3213_v38 }
 0x2e2   :  { %2912 = vmatpush3.bf16.msra.mxu0 %v3147_v37 }
 0x2e3   :  { %2923 = vmatprep.subr.bf16.mxu0 %v3213_v38 }
 0x3a7   :  { %v785_v22 = vpop.f32.mrb[16].mxu1  ;;  %v891_v23 = vpop.f32.mrb[8].mxu0 }
 0x3a8   :  { %v898_v24 = vmax.f32 %v785_v22, %v891_v23  ;;  %v2859_v25 = vpop.f32.mrb[17].mxu1  ;;  %v2879_v26 = vpop.f32.mrb[9].mxu0 }
 0x3a9   :  { %v788_v27 = vpop.f32.mrb[18].mxu1  ;;  %v894_v28 = vpop.f32.mrb[10].mxu0  ;;  %v2535_v25 = vld [vmem:[%s3806_s9 + $0x4] sm:$0xf] }
 0x3aa   :  { %v899_v29 = vmax.f32 %v788_v27, %v894_v28  ;;  %v2860_v30 = vpop.f32.mrb[19].mxu1  ;;  %v2880_v31 = vpop.f32.mrb[11].mxu0  ;;  %v3156_v26 = vld [vmem:[%s3807_s10 + $0x40] sm:$0xff]   ;;  %v3158_v27 = vld [vmem:[%s3807_s10 + $0x48] sm:$0xff]   ;;  %v3160_v28 = vld [vmem:[%s3807_s10 + $0x50] sm:$0xff]  }
 0x3ab   :  { %v3164_v30 = vld [vmem:[%s3807_s10 + $0x60] sm:$0xff]   ;;  %v3165_v31 = vld [vmem:[%s3807_s10 + $0x28] sm:$0xff]  }
 0x3ac   :  { %v900_v32 = vpack.c.bf16 %v899_v29, %v898_v24  ;;  %v1304_v24 = vld [vmem:[%s3806_s9] sm:$0xf]  ;;  %v3162_v29 = vld [vmem:[%s3807_s10 + $0x58] sm:$0xff]  }
 0x3ae   :  { %2882 = vmatpush3.bf16.msra.mxu1 %v900_v32 }
 0x3af   :  { %2887 = vmatprep.subr.bf16.mxu1 %v3213_v38 }
 0x3b1   :  { %2884 = vmatmul.mubr.msk.bf16.vlgmr.msra.gmra.mrb[20].mxu1 %vm908_vm3, %v3140_v33  ;;  %v3167_v33 = vld [vmem:[%s3807_s10 + $0x30] sm:$0xff]  }
 0x3b2   :  { %2888 = vmatpush3.bf16.msra.mxu1 %v900_v32  ;;  %2889 = vmatprep.mubr.msk.bf16.mxu1 %vm3214_vm2, %v3213_v38 }
 0x3b3   :  { %2893 = vmatprep.subr.bf16.mxu1 %v3213_v38 }
 0x3b9   :  { %2890 = vmatmul.mubr.msk.bf16.vlgmr.msra.gmra.mrb[24].mxu1 %vm908_vm3, %v3141_v34  ;;  %v3168_v34 = vld [vmem:[%s3807_s10 + $0x70] sm:$0xff]  }
 0x3ba   :  { %2894 = vmatpush3.bf16.msra.mxu1 %v3144_v35  ;;  %2901 = vmatprep.mubr.msk.bf16.mxu1 %vm3214_vm2, %v3213_v38  ;;  %v3169_v35 = vld [vmem:[%s3807_s10 + $0x38] sm:$0xff]  }
 0x3bb   :  { %2895 = vmatprep.subr.bf16.mxu1 %v3213_v38 }
 0x3be   :  { %2896 = vmatpush3.bf16.msra.mxu1 %v3146_v36  ;;  %v3170_v36 = vld [vmem:[%s3807_s10 + $0x78] sm:$0xff]  }
 0x3bf   :  { %2897 = vmatprep.subr.bf16.mxu1 %v3213_v38 }
 0x3c2   :  { %2898 = vmatpush3.bf16.msra.mxu1 %v3148_v39 }
 0x3c3   :  { %2899 = vmatprep.subr.bf16.mxu1 %v3213_v38 }
 0x3c6   :  { %2900 = vmatpush3.bf16.msra.mxu1 %v3149_v40 }
 0x3c7   :  { %2917 = vmatprep.subr.bf16.mxu1 %v3213_v38 }
 0x484   :  { %v946_v41 = vpop.f32.mrb[20].mxu1 }
 0x485   :  { %v2885_v42 = vpop.f32.mrb[21].mxu1 }
 0x486   :  { %v949_v43 = vpop.f32.mrb[22].mxu1 }
 0x487   :  { %v953_v44 = vpack.c.bf16 %v949_v43, %v946_v41  ;;  %v2886_v45 = vpop.f32.mrb[23].mxu1 }
 0x489   :  { %2914 = vmatmul.mubr.msk.bf16.vlgmr.msra.gmra.mrb[12].mxu0 %vm265_vm1, %v953_v44 }
 0x48a   :  { %2931 = vmatprep.mubr.msk.bf16.mxu0 %vm3214_vm2, %v3213_v38  ;;  %2924 = vmatpush3.bf16.msra.mxu0 %v3151_v52 }
 0x48b   :  { %2925 = vmatprep.subr.bf16.mxu0 %v3213_v38 }
 0x48c   :  { %v1007_v46 = vpop.f32.mrb[24].mxu1 }
 0x48d   :  { %v2891_v47 = vpop.f32.mrb[25].mxu1 }
 0x48e   :  { %v1010_v48 = vpop.f32.mrb[26].mxu1  ;;  %2926 = vmatpush3.bf16.msra.mxu0 %v3152_v53 }
 0x48f   :  { %v1014_v49 = vpack.c.bf16 %v1010_v48, %v1007_v46  ;;  %v2892_v50 = vpop.f32.mrb[27].mxu1  ;;  %2927 = vmatprep.subr.bf16.mxu0 %v3213_v38 }
 0x491   :  { %2902 = vmatmul.mubr.msk.bf16.vlgmr.msra.gmra.mrb[28].mxu1 %vm265_vm1, %v1014_v49 }
 0x492   :  { %2918 = vmatpush3.bf16.msra.mxu1 %v900_v32  ;;  %2919 = vmatprep.mubr.msk.bf16.mxu1 %vm3214_vm2, %v3213_v38  ;;  %v3166_v32 = vld [vmem:[%s3807_s10 + $0x68] sm:$0xff]  }
 0x493   :  { %2935 = vmatprep.subr.bf16.mxu1 %v3213_v38  ;;  %2928 = vmatpush3.bf16.msra.mxu0 %v3153_v54 }
 0x494   :  { %2929 = vmatprep.subr.bf16.mxu0 %v3213_v38 }
 0x497   :  { %2930 = vmatpush3.bf16.msra.mxu0 %v3154_v55 }
 0x498   :  { %2947 = vmatprep.subr.bf16.mxu0 %v3213_v38 }
 0x499   :  { %2920 = vmatmul.mubr.msk.bf16.vlgmr.msra.gmra.mrb[32].mxu1 %vm908_vm3, %v3150_v51 }
 0x49a   :  { %2937 = vmatprep.mubr.msk.bf16.mxu1 %vm3214_vm2, %v3213_v38 }
 0x55c   :  { %v1153_v56 = vpop.f32.mrb[12].mxu0 }
 0x55d   :  { %v2915_v57 = vpop.f32.mrb[13].mxu0 }
 0x55e   :  { %v1156_v58 = vpop.f32.mrb[14].mxu0 }
 0x55f   :  { %v2916_v59 = vpop.f32.mrb[15].mxu0 }
 0x560   :  { %v1606_v59 = vld [vmem:[%s3808_s11] sm:$0x1] }
 0x564   :  { %v1085_v60 = vpop.f32.mrb[28].mxu1 }
 0x565   :  { %v1154_v61 = vadd.f32 %v1153_v56, %v1085_v60  ;;  %v2903_v62 = vpop.f32.mrb[29].mxu1  ;;  %v2570_v60 = vld [vmem:[%s3808_s11 + $0x1] sm:$0x1] }
 0x566   :  { %v1088_v63 = vpop.f32.mrb[30].mxu1  ;;  %v3172_v62 = vld [vmem:[%s3809_s12] sm:$0xff]  }
 0x567   :  { %v1157_v0 = vadd.f32 %v1156_v58, %v1088_v63  ;;  %v2904_v1 = vpop.f32.mrb[31].mxu1  ;;  %v3173_v63 = vld [vmem:[%s3809_s12 + $0x28] sm:$0xff]  }
 0x568   :  { %v3175_v1 = vld [vmem:[%s3809_s12 + $0x30] sm:$0xff]  }
 0x56c   :  { %v1205_v2 = vpop.f32.mrb[32].mxu1 }
 0x56d   :  { %v2921_v3 = vpop.f32.mrb[33].mxu1 }
 0x56e   :  { %v1208_v4 = vpop.f32.mrb[34].mxu1  ;;  %v3177_v3 = vld [vmem:[%s3809_s12 + $0x38] sm:$0xff]  }
 0x56f   :  { %v1212_v5 = vpack.c.bf16 %v1208_v4, %v1205_v2  ;;  %v2922_v6 = vpop.f32.mrb[35].mxu1  ;;  %v3176_v2 = vld [vmem:[%s3809_s12 + $0x10] sm:$0xff]   ;;  %v3178_v4 = vld [vmem:[%s3809_s12 + $0x18] sm:$0xff]  }
 0x571   :  { %2932 = vmatmul.mubr.msk.bf16.vlgmr.msra.gmra.mrb[16].mxu0 %vm265_vm1, %v1212_v5 }
 0x572   :  { %2963 = vmatprep.mubr.msk.bf16.mxu0 %vm3214_vm2, %v3213_v38  ;;  %2948 = vmatpush3.bf16.msra.mxu0 %v3155_v7 }
 0x573   :  { %2949 = vmatprep.subr.bf16.mxu0 %v3213_v38 }
 0x576   :  { %2950 = vmatpush3.bf16.msra.mxu0 %v3157_v8 }
 0x577   :  { %2951 = vmatprep.subr.bf16.mxu0 %v3213_v38 }
 0x57a   :  { %2952 = vmatpush3.bf16.msra.mxu0 %v3159_v9 }
 0x57b   :  { %2953 = vmatprep.subr.bf16.mxu0 %v3213_v38 }
 0x57e   :  { %2954 = vmatpush3.bf16.msra.mxu0 %v3161_v10 }
 0x57f   :  { %2955 = vmatprep.subr.bf16.mxu0 %v3213_v38 }
 0x582   :  { %2956 = vmatpush3.bf16.msra.mxu0 %v3163_v11  ;;  %v3179_v11 = vld [vmem:[%s3809_s12 + $0x40] sm:$0xff]  }
 0x583   :  { %2957 = vmatprep.subr.bf16.mxu0 %v3213_v38 }
 0x586   :  { %2958 = vmatpush3.bf16.msra.mxu0 %v3165_v31 }
 0x587   :  { %2959 = vmatprep.subr.bf16.mxu0 %v3213_v38 }
 0x58a   :  { %2960 = vmatpush3.bf16.msra.mxu0 %v3167_v33 }
 0x58b   :  { %2961 = vmatprep.subr.bf16.mxu0 %v3213_v38 }
 0x58e   :  { %2962 = vmatpush3.bf16.msra.mxu0 %v3169_v35 }
 0x58f   :  { %2987 = vmatprep.subr.bf16.mxu0 %v3213_v38 }
 0x644   :  { %v1283_v12 = vpop.f32.mrb[16].mxu0 }
 0x645   :  { %v1290_v14 = vadd.f32 %v1283_v12, %v1154_v61  ;;  %v2933_v15 = vpop.f32.mrb[17].mxu0  ;;  %v3171_v61 = vld [vmem:[%s3809_s12 + $0x20] sm:$0xff]  }
 0x646   :  { %v1286_v16 = vpop.f32.mrb[18].mxu0 }
 0x647   :  { %v1299_v17 = vadd.f32 %v2533_v13, %v1290_v14  ;;  %v1291_v18 = vadd.f32 %v1286_v16, %v1157_v0  ;;  %v2934_v19 = vpop.f32.mrb[19].mxu0  ;;  %v3174_v0 = vld [vmem:[%s3809_s12 + $0x8] sm:$0xff]   ;;  %v2590_v16 = vld [vmem:[%s3808_s11 + $0x2] sm:$0x1] }
 0x648   :  { %v3181_v19 = vld [vmem:[%s3809_s12 + $0x50] sm:$0xff]  }
 0x649   :  { %v1300_v20 = vadd.f32 %v2533_v13, %v1291_v18  ;;  %v1301_v21 = vmax.f32 %v1299_v17, 0.0  ;;  %v2605_v17 = vld [vmem:[%s3808_s11 + $0x3] sm:$0x1]  ;;  %v3180_v18 = vld [vmem:[%s3809_s12 + $0x48] sm:$0xff]  }
 0x64b   :  { %v1302_v22 = vmax.f32 %v1300_v20, 0.0  ;;  %v3182_v20 = vld [vmem:[%s3809_s12 + $0x60] sm:$0xff]  }
 0x64d   :  { %v1303_v23 = vpack.c.bf16 %v1302_v22, %v1301_v21  ;;  %v3183_v21 = vld [vmem:[%s3809_s12 + $0x58] sm:$0xff]   ;;  %v3184_v22 = vld [vmem:[%s3809_s12 + $0x68] sm:$0xff]  }
 0x64f   :  { %2936 = vmatpush3.bf16.msra.mxu1 %v1303_v23 }
 0x650   :  { %2941 = vmatprep.subr.bf16.mxu1 %v3213_v38 }
 0x652   :  { %2938 = vmatmul.mubr.msk.bf16.vlgmr.msra.gmra.mrb[36].mxu1 %vm908_vm3, %v1304_v24  ;;  %v3186_v24 = vld [vmem:[%s3809_s12 + $0x78] sm:$0xff]  }
 0x653   :  { %2942 = vmatpush3.bf16.msra.mxu1 %v1303_v23  ;;  %2943 = vmatprep.mubr.msk.bf16.mxu1 %vm3214_vm2, %v3213_v38  ;;  %v3185_v23 = vld [vmem:[%s3809_s12 + $0x70] sm:$0xff]  }
 0x654   :  { %2967 = vmatprep.subr.bf16.mxu1 %v3213_v38 }
 0x65a   :  { %2944 = vmatmul.mubr.msk.bf16.vlgmr.msra.gmra.mrb[40].mxu1 %vm908_vm3, %v2535_v25 }
 0x65b   :  { %2968 = vmatpush3.bf16.msra.mxu1 %v3156_v26  ;;  %2983 = vmatprep.mubr.msk.bf16.mxu1 %vm3214_vm2, %v3213_v38 }
 0x65c   :  { %2969 = vmatprep.subr.bf16.mxu1 %v3213_v38 }
 0x65f   :  { %2970 = vmatpush3.bf16.msra.mxu1 %v3158_v27 }
 0x660   :  { %2971 = vmatprep.subr.bf16.mxu1 %v3213_v38 }
 0x663   :  { %2972 = vmatpush3.bf16.msra.mxu1 %v3160_v28 }
 0x664   :  { %2973 = vmatprep.subr.bf16.mxu1 %v3213_v38 }
 0x667   :  { %2974 = vmatpush3.bf16.msra.mxu1 %v3162_v29 }
 0x668   :  { %2975 = vmatprep.subr.bf16.mxu1 %v3213_v38 }
 0x66b   :  { %2976 = vmatpush3.bf16.msra.mxu1 %v3164_v30 }
 0x66c   :  { %2977 = vmatprep.subr.bf16.mxu1 %v3213_v38 }
 0x66f   :  { %2978 = vmatpush3.bf16.msra.mxu1 %v3166_v32 }
 0x670   :  { %2979 = vmatprep.subr.bf16.mxu1 %v3213_v38 }
 0x673   :  { %2980 = vmatpush3.bf16.msra.mxu1 %v3168_v34 }
 0x674   :  { %2981 = vmatprep.subr.bf16.mxu1 %v3213_v38 }
 0x677   :  { %2982 = vmatpush3.bf16.msra.mxu1 %v3170_v36 }
 0x678   :  { %2993 = vmatprep.subr.bf16.mxu1 %v3213_v38 }
 0x725   :  { %v1342_v37 = vpop.f32.mrb[36].mxu1 }
 0x726   :  { %v2939_v39 = vpop.f32.mrb[37].mxu1 }
 0x727   :  { %v1345_v40 = vpop.f32.mrb[38].mxu1 }
 0x728   :  { %v2940_v41 = vpop.f32.mrb[39].mxu1 }
 0x72d   :  { %v1387_v42 = vpop.f32.mrb[40].mxu1 }
 0x72e   :  { %v1393_v43 = vmax.f32 %v1342_v37, %v1387_v42  ;;  %v2945_v44 = vpop.f32.mrb[41].mxu1 }
 0x72f   :  { %v1390_v45 = vpop.f32.mrb[42].mxu1 }
 0x730   :  { %v1394_v46 = vpack.c.bf16 %v1393_v43, %v1393_v43  ;;  %v2946_v47 = vpop.f32.mrb[43].mxu1 }
 0x732   :  { %2964 = vmatmul.mubr.bf16.vlgmr.msra.gmra.mrb[20].mxu0 %v1394_v46  ;;  %2984 = vmatmul.mubr.bf16.vlgmr.msra.gmra.mrb[44].mxu1 %v1394_v46 }
 0x733   :  { %2989 = vmatprep.mubr.msk.bf16.mxu0 %vm3214_vm2, %v3213_v38  ;;  %2995 = vmatprep.mubr.msk.bf16.mxu1 %vm3214_vm2, %v3213_v38 }
 0x805   :  { %v1493_v48 = vpop.f32.mrb[20].mxu0  ;;  %v1598_v49 = vpop.f32.mrb[44].mxu1 }
 0x806   :  { %v1604_v50 = vmax.f32 %v1493_v48, %v1598_v49  ;;  %v2965_v51 = vpop.f32.mrb[21].mxu0  ;;  %v2985_v52 = vpop.f32.mrb[45].mxu1 }
 0x807   :  { %v1496_v53 = vpop.f32.mrb[22].mxu0  ;;  %v1601_v54 = vpop.f32.mrb[46].mxu1  ;;  %v2620_v51 = vld [vmem:[%s3810_s13] ss:$0 sm:$0xff] }
 0x808   :  { %v1605_v55 = vpack.c.bf16 %v1604_v50, %v1604_v50  ;;  %v2966_v56 = vpop.f32.mrb[23].mxu0  ;;  %v2986_v57 = vpop.f32.mrb[47].mxu1 }
 0x80a   :  { %v1613_v58 = vsel %vm1611_vm4, %v1605_v55, 0 }
 0x80b   :  { %2988 = vmatpush3.bf16.msra.mxu0 %v1613_v58  ;;  %2994 = vmatpush3.bf16.msra.mxu1 %v1613_v58 }
 0x80c   :  { %2999 = vmatprep.subr.bf16.mxu0 %v3213_v38  ;;  %3011 = vmatprep.subr.bf16.mxu1 %v3213_v38 }
 0x80e   :  { %2990 = vmatmul.mubr.msk.bf16.vlgmr.msra.gmra.mrb[24].mxu0 %vm1607_vm5, %v1606_v59  ;;  %2996 = vmatmul.mubr.msk.bf16.vlgmr.msra.gmra.mrb[48].mxu1 %vm1607_vm5, %v2570_v60  ;;  %v2108_v59 = vld [vmem:[%s3811_s14] sm:$0x1] }
 0x80f   :  { %3000 = vmatpush3.bf16.msra.mxu0 %v3171_v61  ;;  %3012 = vmatpush3.bf16.msra.mxu1 %v3172_v62  ;;  %v3187_v60 = vld [vmem:[%s3812_s15] sm:$0xff]   ;;  %v3188_v61 = vld [vmem:[%s3812_s15 + $0x8] sm:$0xff]  }
 0x810   :  { %3001 = vmatprep.subr.bf16.mxu0 %v3213_v38  ;;  %3013 = vmatprep.subr.bf16.mxu1 %v3213_v38 }
 0x811   :  { %3007 = vmatprep.mubr.msk.bf16.mxu0 %vm3214_vm2, %v3213_v38  ;;  %3019 = vmatprep.mubr.msk.bf16.mxu1 %vm3214_vm2, %v3213_v38 }
 0x813   :  { %3002 = vmatpush3.bf16.msra.mxu0 %v3173_v63  ;;  %3014 = vmatpush3.bf16.msra.mxu1 %v3174_v0 }
 0x814   :  { %3003 = vmatprep.subr.bf16.mxu0 %v3213_v38  ;;  %3015 = vmatprep.subr.bf16.mxu1 %v3213_v38 }
 0x817   :  { %3004 = vmatpush3.bf16.msra.mxu0 %v3175_v1  ;;  %3016 = vmatpush3.bf16.msra.mxu1 %v3176_v2 }
 0x818   :  { %3005 = vmatprep.subr.bf16.mxu0 %v3213_v38  ;;  %3017 = vmatprep.subr.bf16.mxu1 %v3213_v38 }
 0x81b   :  { %3006 = vmatpush3.bf16.msra.mxu0 %v3177_v3  ;;  %3018 = vmatpush3.bf16.msra.mxu1 %v3178_v4  ;;  %v2302_v3 = vld [vmem:[%s3815_s18] sm:$0xff]  ;;  %v2303_v4 = vld [vmem:[%s3815_s18 + $0x8] sm:$0x3]  ;;  %s3217_s18 = smov [#allocation2]  }
 0x81c   :  { %3023 = vmatprep.subr.bf16.mxu0 %v3213_v38  ;;  %3029 = vmatprep.subr.bf16.mxu1 %v3213_v38  ;;  %s2389_s4 = sshll.u32 %s3217_s18, 4  ;;  %s2390_s4 = int_to_ptr.vmem [resolvable:$true] %s2389_s4 }
 0x81d   :  { %p3194_p1 = scmp.lt.s32.totalorder %s2390_s4, %s2390_s4 }
 0x8e1   :  { %v1649_v5 = vpop.f32.mrb[24].mxu0  ;;  %v1703_v6 = vpop.f32.mrb[48].mxu1 }
 0x8e2   :  { %v1655_v7 = vpack.c.bf16 %v1649_v5, %v1649_v5  ;;  %v1709_v8 = vpack.c.bf16 %v1703_v6, %v1703_v6  ;;  %v2997_v9 = vpop.f32.mrb[49].mxu1  ;;  %v2991_v10 = vpop.f32.mrb[25].mxu0  ;;  %v3215_v5 = vmov 0.0|0.0   ;;  %v3086_v6 = vpack.c.bf16 %v2303_v4, %v2302_v3 }
 0x8e3   :  { %v1706_v12 = vpop.f32.mrb[50].mxu1  ;;  %v1652_v13 = vpop.f32.mrb[26].mxu0  ;;  %v2224_v10 = vld [vmem:[%s3814_s17] sm:$0x3] }
 0x8e4   :  { %v2998_v14 = vpop.f32.mrb[51].mxu1  ;;  %3008 = vmatmul.mubr.msk.bf16.vlgmr.msra.gmra.mrb[28].mxu0 %vm265_vm1, %v1709_v8  ;;  %3020 = vmatmul.mubr.msk.bf16.vlgmr.msra.gmra.mrb[52].mxu1 %vm265_vm1, %v1655_v7  ;;  %v2992_v15 = vpop.f32.mrb[27].mxu0 }
 0x8e5   :  { %3024 = vmatpush3.bf16.msra.mxu0 %v1613_v58  ;;  %3025 = vmatprep.mubr.msk.bf16.mxu0 %vm3214_vm2, %v3213_v38 }
 0x8e6   :  { %3041 = vmatprep.subr.bf16.mxu0 %v3213_v38  ;;  %3030 = vmatpush3.bf16.msra.mxu1 %v3179_v11 }
 0x8e7   :  { %3031 = vmatprep.subr.bf16.mxu1 %v3213_v38  ;;  %3037 = vmatprep.mubr.msk.bf16.mxu1 %vm3214_vm2, %v3213_v38 }
 0x8ea   :  { %3032 = vmatpush3.bf16.msra.mxu1 %v3180_v18 }
 0x8eb   :  { %3033 = vmatprep.subr.bf16.mxu1 %v3213_v38 }
 0x8ec   :  { %3026 = vmatmul.mubr.msk.bf16.vlgmr.msra.gmra.mrb[32].mxu0 %vm1607_vm5, %v2590_v16 }
 0x8ed   :  { %3042 = vmatpush3.bf16.msra.mxu0 %v1613_v58  ;;  %3043 = vmatprep.mubr.msk.bf16.mxu0 %vm3214_vm2, %v3213_v38 }
 0x8ee   :  { %3047 = vmatprep.subr.bf16.mxu0 %v3213_v38  ;;  %3034 = vmatpush3.bf16.msra.mxu1 %v3181_v19 }
 0x8ef   :  { %3035 = vmatprep.subr.bf16.mxu1 %v3213_v38 }
 0x8f2   :  { %3036 = vmatpush3.bf16.msra.mxu1 %v3183_v21 }
 0x8f3   :  { %3059 = vmatprep.subr.bf16.mxu1 %v3213_v38 }
 0x8f4   :  { %3044 = vmatmul.mubr.msk.bf16.vlgmr.msra.gmra.mrb[36].mxu0 %vm1607_vm5, %v2605_v17 }
 0x8f5   :  { %3055 = vmatprep.mubr.msk.bf16.mxu0 %vm3214_vm2, %v3213_v38  ;;  %3048 = vmatpush3.bf16.msra.mxu0 %v3182_v20 }
 0x8f6   :  { %3049 = vmatprep.subr.bf16.mxu0 %v3213_v38 }
 0x8f9   :  { %3050 = vmatpush3.bf16.msra.mxu0 %v3184_v22 }
 0x8fa   :  { %3051 = vmatprep.subr.bf16.mxu0 %v3213_v38 }
 0x8fd   :  { %3052 = vmatpush3.bf16.msra.mxu0 %v3185_v23 }
 0x8fe   :  { %3053 = vmatprep.subr.bf16.mxu0 %v3213_v38 }
 0x901   :  { %3054 = vmatpush3.bf16.msra.mxu0 %v3186_v24 }
 0x902   :  { %3073 = vmatprep.subr.mxu0 %v3213_v38 }
 0x9b7   :  { %v1780_v25 = vpop.f32.mrb[28].mxu0  ;;  %v1847_v26 = vpop.f32.mrb[52].mxu1 }
 0x9b8   :  { %v1848_v27 = vadd.f32 %v1847_v26, %v1780_v25  ;;  %v3009_v28 = vpop.f32.mrb[29].mxu0  ;;  %v3021_v29 = vpop.f32.mrb[53].mxu1 }
 0x9b9   :  { %v1783_v30 = vpop.f32.mrb[30].mxu0  ;;  %v1850_v31 = vpop.f32.mrb[54].mxu1 }
 0x9ba   :  { %v3010_v32 = vpop.f32.mrb[31].mxu0  ;;  %v3022_v33 = vpop.f32.mrb[55].mxu1 }
 0x9bf   :  { %v1892_v34 = vpop.f32.mrb[32].mxu0 }
 0x9c0   :  { %v1898_v35 = vpack.c.bf16 %v1892_v34, %v1892_v34  ;;  %v3027_v36 = vpop.f32.mrb[33].mxu0 }
 0x9c1   :  { %v1895_v37 = vpop.f32.mrb[34].mxu0 }
 0x9c2   :  { %v3028_v39 = vpop.f32.mrb[35].mxu0  ;;  %3038 = vmatmul.mubr.msk.bf16.vlgmr.msra.gmra.mrb[56].mxu1 %vm265_vm1, %v1898_v35 }
 0x9c3   :  { %3061 = vmatprep.mubr.msk.bf16.mxu1 %vm3214_vm2, %v3213_v38 }
 0x9c7   :  { %v2015_v40 = vpop.f32.mrb[36].mxu0 }
 0x9c8   :  { %v2021_v41 = vpack.c.bf16 %v2015_v40, %v2015_v40  ;;  %v3045_v42 = vpop.f32.mrb[37].mxu0 }
 0x9c9   :  { %v2018_v43 = vpop.f32.mrb[38].mxu0 }
 0x9ca   :  { %v3046_v44 = vpop.f32.mrb[39].mxu0  ;;  %3056 = vmatmul.mubr.msk.bf16.vlgmr.msra.gmra.mrb[40].mxu0 %vm265_vm1, %v2021_v41 }
 0x9cb   :  { %3075 = vmatprep.mubr.msk.f32.mxu0 %vm3214_vm2, %v3213_v38 }
 0xa95   :  { %v1969_v45 = vpop.f32.mrb[56].mxu1 }
 0xa96   :  { %v1975_v46 = vadd.f32 %v1969_v45, %v1848_v27  ;;  %v3039_v47 = vpop.f32.mrb[57].mxu1 }
 0xa97   :  { %v1972_v48 = vpop.f32.mrb[58].mxu1 }
 0xa98   :  { %v3040_v49 = vpop.f32.mrb[59].mxu1 }
 0xa9d   :  { %v2092_v50 = vpop.f32.mrb[40].mxu0 }
 0xa9e   :  { %v2098_v52 = vadd.f32 %v2092_v50, %v1975_v46  ;;  %v3057_v53 = vpop.f32.mrb[41].mxu0 }
 0xa9f   :  { %v2095_v54 = vpop.f32.mrb[42].mxu0 }
 0xaa0   :  { %v2106_v55 = vadd.f32 %v2620_v51, %v2098_v52  ;;  %v3058_v56 = vpop.f32.mrb[43].mxu0 }
 0xaa2   :  { %v2107_v57 = vpack.c.bf16 %v2106_v55, %v2106_v55 }
 0xaa4   :  { %v2115_v58 = vsel %vm2113_vm6, %v2107_v57, 0 }
 0xaa5   :  { %3060 = vmatpush3.bf16.msra.mxu1 %v2115_v58 }
 0xaa6   :  { %3065 = vmatprep.subr.bf16.mxu1 %v3213_v38 }
 0xaa8   :  { %3062 = vmatmul.mubr.msk.bf16.vlgmr.msra.gmra.mrb[60].mxu1 %vm2109_vm7, %v2108_v59 }
 0xaa9   :  { %3066 = vmatpush3.bf16.msra.mxu1 %v3187_v60  ;;  %3069 = vmatprep.mubr.msk.bf16.mxu1 %vm3214_vm2, %v3213_v38 }
 0xaaa   :  { %3067 = vmatprep.subr.bf16.mxu1 %v3213_v38 }
 0xaad   :  { %3068 = vmatpush3.bf16.msra.mxu1 %v3188_v61 }
 0xaae   :  { %3085 = vmatprep.subr.bf16.mxu1 %v3215_v5 }
 0xb7b   :  { %v2151_v62 = vpop.f32.mrb[60].mxu1 }
 0xb7c   :  { %v2157_v63 = vpack.c.bf16 %v2151_v62, %v2151_v62  ;;  %v3063_v0 = vpop.f32.mrb[61].mxu1 }
 0xb7d   :  { %v2154_v1 = vpop.f32.mrb[62].mxu1 }
 0xb7e   :  { %v3064_v2 = vpop.f32.mrb[63].mxu1  ;;  %3070 = vmatmul.mubr.msk.bf16.vlgmr.msra.gmra.mrb[64].mxu1 %vm94_vm0, %v2157_v63 }
 0xb7f   :  { %3082 = vmatprep.mubr.msk.f32.mxu1 %vm3214_vm2, %v3213_v38  ;;  %3088 = vmatpush3.bf16.msk.msra.mxu1 %vm3087_vm10, %v3086_v6  ;;  %v2622_v38 = vld [vmem:[%s3813_s16] ss:$0 sm:$0xff]  ;;  %s3189_s16 = scalar_lea.vmem %s2390_s4, 32 }
 0xb80   :  { %p3190_p0 = scmp.ne.s32.totalorder %s2390_s4, %s3189_s16  ;;  %p3195_p2 = scmp.lt.s32.totalorder %s3189_s16, %s3189_s16 }
 0xb82   :  { %p3196_p3 = por %p3195_p2, %p3194_p1 }
 0xb84   :  { %p3197_p4 = pnand %p3196_p3, %p3190_p0 }
 0xc51   :  { %v2218_v7 = vpop.f32.mrb[64].mxu1 }
 0xc52   :  { %v2219_v8 = vadd.f32 %v2622_v38, %v2218_v7  ;;  %v3071_v9 = vpop.f32.mrb[65].mxu1 }
 0xc53   :  { %v2221_v11 = vpop.f32.mrb[66].mxu1 }
 0xc54   :  { %v3072_v12 = vpop.f32.mrb[67].mxu1  ;;  %3074 = vmatpush3.msk.msra.mxu0 %vm2228_vm8, %v2219_v8 }
 0xc55   :  { %3076 = vmatmul.mubr.msk.f32.vlgmr.msra.gmra.mrb[44].mxu0 %vm2109_vm7, %v2224_v10 }
 0xd28   :  { %v2298_v13 = vpop.f32.mrb[44].mxu0 }
 0xd29   :  { %v3077_v14 = vpop.f32.mrb[45].mxu0  ;;  %3083 = vmatmul.mubr.msk.f32.vlgmr.msra.gmra.mrb[68].mxu1 %vm2304_vm11, %v2298_v13 }
 0xdfc   :  { %v2377_v15 = vpop.f32.mrb[68].mxu1 }
 0xdfd   :  { %2382 = vst.msk [vmem:[#allocation2] sm:$0x3] %vm2381_vm12, %v2377_v15  ;;  %v3084_v16 = vpop.f32.mrb[69].mxu1 }
 0xdfe   :  { %3200 = shalt.err (!%p3197_p4)
}
 0xdff   :  { %s3201_s1 = scalar_lea.hbm %s3816_s19, 32 }
 0xe00   :  { %p3202_p5 = scmp.ne.s32.totalorder %s3816_s19, %s3201_s1  ;;  %p3205_p6 = scmp.lt.u32.totalorder %s3201_s1, %s3816_s19 }
 0xe02   :  { %p3207_p7 = pnand %p3205_p6, %p3202_p5 }
 0xe04   :  { %3210 = shalt.err (!%p3207_p7)
}
 0xe05   :  { %2392 = dma.vmem_to_hbm [thread:$0]  %s2390_s4, 32, %s3816_s19, [#allocation3]  }
 0xe06   :  { %3211 = dma.done.wait [#allocation3], 32  }
 0xe07   :  { %3212 = vsyncadd [#allocation3], 4294967264 }
 0xe08   :  { %2396 = vsyncpa [#allocation3], 1 }

</bundles_post_ra>
